<compile_context>
chip_gen: v7x
topology: tpu7x:2x2x1
jax: 0.10.0
libtpu: 0.0.40
codegen_flags: <defaults>
</compile_context>

<pallas_src>
import jax
import jax.numpy as jnp
import numpy as np
from jax.experimental import pallas as pl
from jax.experimental.pallas import tpu as pltpu

# Module hyper-parameters (from __init__, deterministic).
NOISE_THRESH = 0.002
KERNEL_SIZE = 3
K_INIT = 100.0        # nn.Parameter(torch.tensor(100.0)) -- deterministic init
SKIP_THRESH = 1e-4

_NP = 11              # number of derived per-image parameter columns
_NAUX = 6             # edge-mask / iota rows passed to the kernel


def _pick_images_per_block(n, hw):
    """Images per grid step: big enough to amortize per-step overhead, small
    enough that ~20 live (nb, hw) f32 temporaries stay well inside VMEM, and
    leaving >= 2 grid steps so megacore (v7x) can split the grid."""
    budget_bytes = 8 << 20
    cap = max(1, budget_bytes // (20 * hw * 4))
    nb = 1
    for d in range(1, n + 1):
        if n % d == 0 and d <= cap:
            nb = d
    if n // nb < 2:
        for d in range(nb - 1, 0, -1):
            if n % d == 0 and n // d >= 2:
                nb = d
                break
    return nb


def _edge_aux(H, W):
    """Host-built (no in-kernel int div/mod) edge masks over the flat HW axis,
    plus an iota row and its np.roll(+1) used as a rotate-direction probe."""
    HW = H * W
    idx = np.arange(HW)
    col = idx % W
    row = idx // W
    aux = np.zeros((_NAUX, HW), np.float32)
    aux[0] = col == 0
    aux[1] = col == W - 1
    aux[2] = row == 0
    aux[3] = row == H - 1
    aux[4] = idx.astype(np.float32)
    aux[5] = np.roll(aux[4], 1)
    return jnp.asarray(aux)


def _derived_params(params_flat, k):
    """Clamp raw params and derive per-image constants consumed by the kernel."""
    p = params_flat.astype(jnp.float32)
    sigma_s = jnp.clip(p[:, 0], 0.2, 5.0)
    sigma_r = jnp.clip(p[:, 1], 0.01, 1.0)
    sigma_f = jnp.clip(p[:, 2], 0.2, 3.0)
    lam = jnp.clip(p[:, 3], 0.1, 2.0)
    tau = jnp.clip(p[:, 4], 0.5, 5.0)
    gain = jnp.clip(p[:, 5], 0.2, 2.0)
    offset = jnp.clip(p[:, 6], 0.01, 1.0)
    a = -0.5 / (sigma_r * sigma_r)            # colour exponent
    sb1 = -0.5 / (sigma_s * sigma_s)          # spatial exponent, rsq == 1
    sb2 = 2.0 * sb1                           # spatial exponent, rsq == 2
    ef = jnp.exp(-0.5 / (sigma_f * sigma_f))  # gaussian off-centre tap weight
    ef2 = ef * ef
    inv_gd = 1.0 / ((1.0 + 2.0 * ef) ** 2)    # 1 / gaussian normalization
    inv_tau = 1.0 / tau
    # trace-safe clamp of the learned sigmoid steepness (nn.Parameter k)
    k_pos = jnp.maximum(jnp.abs(jnp.asarray(k, dtype=jnp.float32)), 1.0)
    k_col = jnp.broadcast_to(k_pos, a.shape)
    return jnp.stack([a, sb1, sb2, ef, ef2, inv_gd, lam, inv_tau, gain,
                      offset, k_col], axis=1)


def _make_kernel(W, C, HW, NB, noise_thresh, skip_thresh):
    """Per-block kernel: NB images, C channel planes, flat HW lane axis."""

    def kernel(dp_ref, aux_ref, x_ref, out_ref):
        # ---- per-image filter constants, each (NB, 1) ----
        dp = dp_ref[0]                                    # (NB, _NP)
        a, sb1, sb2 = dp[:, 0:1], dp[:, 1:2], dp[:, 2:3]
        ef, ef2, inv_gd = dp[:, 3:4], dp[:, 4:5], dp[:, 5:6]
        lam, inv_tau = dp[:, 6:7], dp[:, 7:8]
        gain, offset, k_pos = dp[:, 8:9], dp[:, 9:10], dp[:, 10:11]

        # ---- edge masks (full shape so no i1 broadcasts are needed) ----
        def bmask(rowvec):
            return jnp.broadcast_to(rowvec, (NB, HW)) > 0.5

        is_left, is_right = bmask(aux_ref[0:1, :]), bmask(aux_ref[1:2, :])
        is_top, is_bot = bmask(aux_ref[2:3, :]), bmask(aux_ref[3:4, :])

        # Rotate-direction guard: probe one roll of the iota row against the
        # host-computed np.roll, so the shift helper below is correct under
        # either rotate convention.
        probe = pltpu.roll(aux_ref[4:5, :], 1, axis=1)
        dir_ok = (jnp.broadcast_to(probe, (NB, HW))
                  == jnp.broadcast_to(aux_ref[5:6, :], (NB, HW)))

        def shift_pair(v, s):
            """Return (v[j-s], v[j+s]) along the flat HW axis (wrapping)."""
            r1 = pltpu.roll(v, s, axis=1)
            r2 = pltpu.roll(v, HW - s, axis=1)
            minus = jnp.where(dir_ok, r1, r2)
            plus = jnp.where(dir_ok, r2, r1)
            return minus, plus

        # ---- centres and reflect-padded vertical neighbours ----
        xs = [x_ref[c, 0, :, :] for c in range(C)]        # (NB, HW) each
        ups, downs = [], []
        for c in range(C):
            vm, vp = shift_pair(xs[c], W)
            ups.append(jnp.where(is_top, vp, vm))         # reflect at row 0
            downs.append(jnp.where(is_bot, vm, vp))       # reflect at row H-1

        # ---- 3x3 bilateral + gaussian accumulation ----
        # Centre tap handled analytically: colour distance 0 -> weight exp(0)=1.
        num_bf = [xs[c] for c in range(C)]
        gf_acc = [xs[c] for c in range(C)]
        den_bf = jnp.ones((NB, HW), jnp.float32)

        rows3 = (ups, xs, downs)
        for dy in range(3):
            rcs = rows3[dy]
            lefts, rights = [], []
            for c in range(C):
                hm, hp = shift_pair(rcs[c], 1)
                lefts.append(jnp.where(is_left, hp, hm))      # reflect col 0
                rights.append(jnp.where(is_right, hm, hp))    # reflect col W-1
            cols3 = (lefts, rcs, rights)
            for dx in range(3):
                if dy == 1 and dx == 1:
                    continue                                  # centre tap
                nbs = cols3[dx]
                rsq = (dy - 1) ** 2 + (dx - 1) ** 2           # 1 or 2
                # bilateral colour distance: L1 over channels, squared
                cd = jnp.abs(nbs[0] - xs[0])
                for c in range(1, C):
                    cd = cd + jnp.abs(nbs[c] - xs[c])
                cw = jnp.exp(a * (cd * cd) + (sb1 if rsq == 1 else sb2))
                den_bf = den_bf + cw
                gw = ef if rsq == 1 else ef2
                for c in range(C):
                    num_bf[c] = num_bf[c] + nbs[c] * cw
                    gf_acc[c] = gf_acc[c] + nbs[c] * gw

        # One reciprocal shared by all C channels (den_bf >= 1, gdenom > 1, so
        # no NaN/Inf can arise from finite inputs -> nan_to_num dropped).
        inv_den = 1.0 / den_bf

        noise_sum = jnp.zeros((NB, 1), jnp.float32)
        adet_sum = jnp.zeros((NB, 1), jnp.float32)
        sharp = []
        for c in range(C):
            bf_c = num_bf[c] * inv_den
            gf_c = gf_acc[c] * inv_gd
            detail = xs[c] - gf_c
            adet = jnp.abs(detail)
            denom = jnp.maximum(xs[c] + offset, 1e-5)
            noise = jnp.minimum(adet * gain / denom, 10.0)    # already >= 0
            r = noise * inv_tau
            rm = 1.0 - jnp.exp(jnp.maximum(-(r * r), -88.0))
            noise_mask = rm * rm
            # numerically stable sigmoid with a single exp + shared reciprocal
            z = k_pos * (adet - noise_thresh)
            e = jnp.exp(-jnp.abs(z))
            inv1pe = 1.0 / (1.0 + e)
            detail_mask = jnp.where(z >= 0.0, inv1pe, e * inv1pe)
            noise_sum = noise_sum + jnp.sum(noise, axis=1, keepdims=True)
            adet_sum = adet_sum + jnp.sum(adet, axis=1, keepdims=True)
            sharp.append(bf_c + lam * detail * noise_mask * detail_mask)

        # per-image skip gate (mean over all C*H*W elements)
        inv_cnt = 1.0 / float(C * HW)
        skip = jnp.logical_or(
            jnp.broadcast_to(noise_sum * inv_cnt, (NB, HW)) < skip_thresh,
            jnp.broadcast_to(adet_sum * inv_cnt, (NB, HW)) < skip_thresh)
        for c in range(C):
            out_c = jnp.where(skip, xs[c], sharp[c])
            out_ref[c, 0, :, :] = jnp.clip(out_c, 1e-5, 1.0)

    return kernel


def denoising_sharpening(images, params, k=K_INIT,
                         noise_thresh=NOISE_THRESH, skip_thresh=SKIP_THRESH):
    B, P, H, W, C = images.shape
    N, HW = B * P, H * W
    NB = _pick_images_per_block(N, HW)
    G = N // NB

    # Single fused cast+transpose pass to channel planes with flattened HW.
    # (Reflect padding happens inside the kernel -> no padded HBM copy.)
    x = jnp.transpose(images.reshape(N, HW, C).astype(jnp.float32), (2, 0, 1))
    x = x.reshape(C, G, NB, HW)

    dparams = _derived_params(params.reshape(N, 7), k).reshape(G, NB, _NP)
    aux = _edge_aux(H, W)

    kernel = _make_kernel(W, C, HW, NB, float(noise_thresh), float(skip_thresh))
    out = pl.pallas_call(
        kernel,
        out_shape=jax.ShapeDtypeStruct((C, G, NB, HW), jnp.float32),
        grid=(G,),
        in_specs=[
            pl.BlockSpec((1, NB, _NP), lambda i: (i, 0, 0)),        # params
            pl.BlockSpec((_NAUX, HW), lambda i: (0, 0)),            # edge aux
            pl.BlockSpec((C, 1, NB, HW), lambda i: (0, i, 0, 0)),   # images
        ],
        out_specs=pl.BlockSpec((C, 1, NB, HW), lambda i: (0, i, 0, 0)),
        compiler_params=pltpu.CompilerParams(
            dimension_semantics=("parallel",),     # v7x: shard grid over 2 TCs
            vmem_limit_bytes=32 << 20),            # v5e default is only 16 MiB
    )(dparams, aux, x)

    out = jnp.transpose(out.reshape(C, N, H, W), (1, 2, 3, 0))
    return out.reshape(B, P, H, W, C)


def reference(images, params, k=K_INIT,
              noise_thresh=NOISE_THRESH, skip_thresh=SKIP_THRESH):
    """Pure-JAX reference mirroring the PyTorch forward (for validation)."""
    B, P, H, W, C = images.shape
    N = B * P
    x = jnp.transpose(images.reshape(N, H, W, C).astype(jnp.float32),
                      (0, 3, 1, 2))
    p = params.reshape(N, 7).astype(jnp.float32)

    def col(j, lo, hi):
        return jnp.clip(p[:, j], lo, hi)[:, None, None, None]

    sigma_s, sigma_r, sigma_f = col(0, 0.2, 5.0), col(1, 0.01, 1.0), col(2, 0.2, 3.0)
    lam, tau = col(3, 0.1, 2.0), col(4, 0.5, 5.0)
    gain, offset = col(5, 0.2, 2.0), col(6, 0.01, 1.0)

    xpad = jnp.pad(x, ((0, 0), (0, 0), (1, 1), (1, 1)), mode="reflect")
    es = jnp.exp(-0.5 / (sigma_s * sigma_s))
    ef = jnp.exp(-0.5 / (sigma_f * sigma_f))
    inv2sr2 = 0.5 / (sigma_r * sigma_r)
    gs = es / (1.0 + 2.0 * es)        # normalized 1D spatial gaussian (off-center)
    gs0 = 1.0 / (1.0 + 2.0 * es)      # center
    gfw = ef / (1.0 + 2.0 * ef)
    gfw0 = 1.0 / (1.0 + 2.0 * ef)

    num_bf = jnp.zeros_like(x)
    den_bf = jnp.zeros((N, 1, H, W), jnp.float32)
    gf = jnp.zeros_like(x)
    for dy in range(3):
        for dx in range(3):
            xn = xpad[:, :, dy:dy + H, dx:dx + W]
            ws = (gs0 if dy == 1 else gs) * (gs0 if dx == 1 else gs)
            wg = (gfw0 if dy == 1 else gfw) * (gfw0 if dx == 1 else gfw)
            cd = jnp.sum(jnp.abs(xn - x), axis=1, keepdims=True)
            cw = jnp.exp(-inv2sr2 * cd * cd) * ws
            num_bf += xn * cw
            den_bf += cw
            gf += xn * wg
    bf = num_bf / den_bf
    bf = jnp.nan_to_num(bf, nan=0.0, posinf=1.0, neginf=0.0)
    gf = jnp.nan_to_num(gf, nan=0.0, posinf=1.0, neginf=0.0)

    detail = x - gf
    adet = jnp.abs(detail)
    denom = jnp.maximum(x + offset, 1e-5)
    noise_est = jnp.clip(adet * gain / denom, 0.0, 10.0)
    exp_i = jnp.clip(-(noise_est / tau) ** 2, -88.0, 0.0)
    noise_mask = (1.0 - jnp.exp(exp_i)) ** 2
    k_pos = jnp.maximum(jnp.abs(jnp.asarray(k, dtype=jnp.float32)), 1.0)
    detail_mask = jax.nn.sigmoid(k_pos * (adet - noise_thresh))
    avg_noise = jnp.mean(noise_est, axis=(1, 2, 3), keepdims=True)
    avg_detail = jnp.mean(adet, axis=(1, 2, 3), keepdims=True)
    should_skip = (avg_noise < skip_thresh) | (avg_detail < skip_thresh)
    sharpened = jnp.where(should_skip, x,
                          bf + lam * detail * noise_mask * detail_mask)
    sharpened = jnp.clip(sharpened, 1e-5, 1.0)
    return jnp.transpose(sharpened, (0, 2, 3, 1)).reshape(B, P, H, W, C)


if __name__ == "__main__":
    key = jax.random.PRNGKey(0)
    k_img, k_par = jax.random.split(key)
    B, P, H, W, C = 2, 4, 16, 16, 3
    images = jax.random.uniform(k_img, (B, P, H, W, C), dtype=jnp.float32)
    params = jax.random.uniform(k_par, (B, P, 7), dtype=jnp.float32,
                                minval=0.05, maxval=2.0)

    out = jax.block_until_ready(denoising_sharpening(images, params))
    ref = jax.block_until_ready(reference(images, params))

    np.testing.assert_allclose(np.asarray(out), np.asarray(ref),
                               rtol=2e-3, atol=2e-3)
    assert out.shape == (B, P, H, W, C)
    print("KERNEL_OK")
</pallas_src>

<mosaic_0001>
module attributes {stable_mosaic.version = 11 : i64} {
  func.func @kernel(%arg0: i32, %arg1: memref<1x4x11xf32, #tpu.memory_space<vmem>>, %arg2: memref<6x256xf32, #tpu.memory_space<vmem>>, %arg3: memref<3x1x4x256xf32, #tpu.memory_space<vmem>>, %arg4: memref<3x1x4x256xf32, #tpu.memory_space<vmem>>) attributes {dimension_semantics = [#tpu.dimension_semantics<parallel>], iteration_bounds = array<i64: 2>, scalar_prefetch = 0 : i64, scratch_operands = 0 : i64, tpu.core_type = #tpu.core_type<tc>, window_params = [{transform_indices = @transform_0, window_bounds = array<i64: 1, 4, 11>}, {pipeline_mode = #tpu.pipeline_mode<synchronous>, transform_indices = @transform_1, window_bounds = array<i64: 6, 256>}, {transform_indices = @transform_2, window_bounds = array<i64: 3, 1, 4, 256>}, {transform_indices = @transform_3, window_bounds = array<i64: 3, 1, 4, 256>}]} {
    %c0 = arith.constant 0 : index
    %c0_0 = arith.constant 0 : index
    %c0_1 = arith.constant 0 : index
    %0 = vector.load %arg1[%c0, %c0_0, %c0_1] : memref<1x4x11xf32, #tpu.memory_space<vmem>>, vector<1x4x11xf32>
    %1 = vector.shape_cast %0 : vector<1x4x11xf32> to vector<4x11xf32>
    %2 = vector.extract_strided_slice %1 {offsets = [0, 0], sizes = [4, 1], strides = [1, 1]} : vector<4x11xf32> to vector<4x1xf32>
    %3 = vector.extract_strided_slice %1 {offsets = [0, 1], sizes = [4, 1], strides = [1, 1]} : vector<4x11xf32> to vector<4x1xf32>
    %4 = vector.extract_strided_slice %1 {offsets = [0, 2], sizes = [4, 1], strides = [1, 1]} : vector<4x11xf32> to vector<4x1xf32>
    %5 = vector.extract_strided_slice %1 {offsets = [0, 3], sizes = [4, 1], strides = [1, 1]} : vector<4x11xf32> to vector<4x1xf32>
    %6 = vector.extract_strided_slice %1 {offsets = [0, 4], sizes = [4, 1], strides = [1, 1]} : vector<4x11xf32> to vector<4x1xf32>
    %7 = vector.extract_strided_slice %1 {offsets = [0, 5], sizes = [4, 1], strides = [1, 1]} : vector<4x11xf32> to vector<4x1xf32>
    %8 = vector.extract_strided_slice %1 {offsets = [0, 6], sizes = [4, 1], strides = [1, 1]} : vector<4x11xf32> to vector<4x1xf32>
    %9 = vector.extract_strided_slice %1 {offsets = [0, 7], sizes = [4, 1], strides = [1, 1]} : vector<4x11xf32> to vector<4x1xf32>
    %10 = vector.extract_strided_slice %1 {offsets = [0, 8], sizes = [4, 1], strides = [1, 1]} : vector<4x11xf32> to vector<4x1xf32>
    %11 = vector.extract_strided_slice %1 {offsets = [0, 9], sizes = [4, 1], strides = [1, 1]} : vector<4x11xf32> to vector<4x1xf32>
    %12 = vector.extract_strided_slice %1 {offsets = [0, 10], sizes = [4, 1], strides = [1, 1]} : vector<4x11xf32> to vector<4x1xf32>
    %c0_2 = arith.constant 0 : index
    %c0_3 = arith.constant 0 : index
    %13 = vector.load %arg2[%c0_2, %c0_3] : memref<6x256xf32, #tpu.memory_space<vmem>>, vector<1x256xf32>
    %14 = vector.shape_cast %13 : vector<1x256xf32> to vector<1x256xf32>
    %15 = vector.broadcast %14 : vector<1x256xf32> to vector<4x256xf32>
    %cst = arith.constant 5.000000e-01 : f32
    %16 = vector.broadcast %cst : f32 to vector<4x256xf32>
    %17 = arith.cmpf ogt, %15, %16 : vector<4x256xf32>
    %c1 = arith.constant 1 : index
    %c0_4 = arith.constant 0 : index
    %18 = vector.load %arg2[%c1, %c0_4] : memref<6x256xf32, #tpu.memory_space<vmem>>, vector<1x256xf32>
    %19 = vector.shape_cast %18 : vector<1x256xf32> to vector<1x256xf32>
    %20 = vector.broadcast %19 : vector<1x256xf32> to vector<4x256xf32>
    %cst_5 = arith.constant 5.000000e-01 : f32
    %21 = vector.broadcast %cst_5 : f32 to vector<4x256xf32>
    %22 = arith.cmpf ogt, %20, %21 : vector<4x256xf32>
    %c2 = arith.constant 2 : index
    %c0_6 = arith.constant 0 : index
    %23 = vector.load %arg2[%c2, %c0_6] : memref<6x256xf32, #tpu.memory_space<vmem>>, vector<1x256xf32>
    %24 = vector.shape_cast %23 : vector<1x256xf32> to vector<1x256xf32>
    %25 = vector.broadcast %24 : vector<1x256xf32> to vector<4x256xf32>
    %cst_7 = arith.constant 5.000000e-01 : f32
    %26 = vector.broadcast %cst_7 : f32 to vector<4x256xf32>
    %27 = arith.cmpf ogt, %25, %26 : vector<4x256xf32>
    %c3 = arith.constant 3 : index
    %c0_8 = arith.constant 0 : index
    %28 = vector.load %arg2[%c3, %c0_8] : memref<6x256xf32, #tpu.memory_space<vmem>>, vector<1x256xf32>
    %29 = vector.shape_cast %28 : vector<1x256xf32> to vector<1x256xf32>
    %30 = vector.broadcast %29 : vector<1x256xf32> to vector<4x256xf32>
    %cst_9 = arith.constant 5.000000e-01 : f32
    %31 = vector.broadcast %cst_9 : f32 to vector<4x256xf32>
    %32 = arith.cmpf ogt, %30, %31 : vector<4x256xf32>
    %c4 = arith.constant 4 : index
    %c0_10 = arith.constant 0 : index
    %33 = vector.load %arg2[%c4, %c0_10] : memref<6x256xf32, #tpu.memory_space<vmem>>, vector<1x256xf32>
    %c1_i32 = arith.constant 1 : i32
    %34 = tpu.dynamic_rotate %33 by %c1_i32 dim 1 : vector<1x256xf32>, i32 -> vector<1x256xf32>
    %35 = vector.shape_cast %34 : vector<1x256xf32> to vector<1x256xf32>
    %36 = vector.broadcast %35 : vector<1x256xf32> to vector<4x256xf32>
    %c5 = arith.constant 5 : index
    %c0_11 = arith.constant 0 : index
    %37 = vector.load %arg2[%c5, %c0_11] : memref<6x256xf32, #tpu.memory_space<vmem>>, vector<1x256xf32>
    %38 = vector.shape_cast %37 : vector<1x256xf32> to vector<1x256xf32>
    %39 = vector.broadcast %38 : vector<1x256xf32> to vector<4x256xf32>
    %40 = arith.cmpf oeq, %36, %39 : vector<4x256xf32>
    %c0_12 = arith.constant 0 : index
    %c0_13 = arith.constant 0 : index
    %c0_14 = arith.constant 0 : index
    %c0_15 = arith.constant 0 : index
    %41 = vector.load %arg3[%c0_12, %c0_13, %c0_14, %c0_15] : memref<3x1x4x256xf32, #tpu.memory_space<vmem>>, vector<1x1x4x256xf32>
    %42 = vector.shape_cast %41 : vector<1x1x4x256xf32> to vector<4x256xf32>
    %c1_16 = arith.constant 1 : index
    %c0_17 = arith.constant 0 : index
    %c0_18 = arith.constant 0 : index
    %c0_19 = arith.constant 0 : index
    %43 = vector.load %arg3[%c1_16, %c0_17, %c0_18, %c0_19] : memref<3x1x4x256xf32, #tpu.memory_space<vmem>>, vector<1x1x4x256xf32>
    %44 = vector.shape_cast %43 : vector<1x1x4x256xf32> to vector<4x256xf32>
    %c2_20 = arith.constant 2 : index
    %c0_21 = arith.constant 0 : index
    %c0_22 = arith.constant 0 : index
    %c0_23 = arith.constant 0 : index
    %45 = vector.load %arg3[%c2_20, %c0_21, %c0_22, %c0_23] : memref<3x1x4x256xf32, #tpu.memory_space<vmem>>, vector<1x1x4x256xf32>
    %46 = vector.shape_cast %45 : vector<1x1x4x256xf32> to vector<4x256xf32>
    %c16_i32 = arith.constant 16 : i32
    %47 = tpu.dynamic_rotate %42 by %c16_i32 dim 1 : vector<4x256xf32>, i32 -> vector<4x256xf32>
    %c240_i32 = arith.constant 240 : i32
    %48 = tpu.dynamic_rotate %42 by %c240_i32 dim 1 : vector<4x256xf32>, i32 -> vector<4x256xf32>
    %49 = arith.select %40, %47, %48 : vector<4x256xi1>, vector<4x256xf32>
    %50 = arith.select %40, %48, %47 : vector<4x256xi1>, vector<4x256xf32>
    %51 = arith.select %27, %50, %49 : vector<4x256xi1>, vector<4x256xf32>
    %52 = arith.select %32, %49, %50 : vector<4x256xi1>, vector<4x256xf32>
    %c16_i32_24 = arith.constant 16 : i32
    %53 = tpu.dynamic_rotate %44 by %c16_i32_24 dim 1 : vector<4x256xf32>, i32 -> vector<4x256xf32>
    %c240_i32_25 = arith.constant 240 : i32
    %54 = tpu.dynamic_rotate %44 by %c240_i32_25 dim 1 : vector<4x256xf32>, i32 -> vector<4x256xf32>
    %55 = arith.select %40, %53, %54 : vector<4x256xi1>, vector<4x256xf32>
    %56 = arith.select %40, %54, %53 : vector<4x256xi1>, vector<4x256xf32>
    %57 = arith.select %27, %56, %55 : vector<4x256xi1>, vector<4x256xf32>
    %58 = arith.select %32, %55, %56 : vector<4x256xi1>, vector<4x256xf32>
    %c16_i32_26 = arith.constant 16 : i32
    %59 = tpu.dynamic_rotate %46 by %c16_i32_26 dim 1 : vector<4x256xf32>, i32 -> vector<4x256xf32>
    %c240_i32_27 = arith.constant 240 : i32
    %60 = tpu.dynamic_rotate %46 by %c240_i32_27 dim 1 : vector<4x256xf32>, i32 -> vector<4x256xf32>
    %61 = arith.select %40, %59, %60 : vector<4x256xi1>, vector<4x256xf32>
    %62 = arith.select %40, %60, %59 : vector<4x256xi1>, vector<4x256xf32>
    %63 = arith.select %27, %62, %61 : vector<4x256xi1>, vector<4x256xf32>
    %64 = arith.select %32, %61, %62 : vector<4x256xi1>, vector<4x256xf32>
    %cst_28 = arith.constant 1.000000e+00 : f32
    %65 = vector.broadcast %cst_28 : f32 to vector<4x256xf32>
    %c1_i32_29 = arith.constant 1 : i32
    %66 = tpu.dynamic_rotate %51 by %c1_i32_29 dim 1 : vector<4x256xf32>, i32 -> vector<4x256xf32>
    %c255_i32 = arith.constant 255 : i32
    %67 = tpu.dynamic_rotate %51 by %c255_i32 dim 1 : vector<4x256xf32>, i32 -> vector<4x256xf32>
    %68 = arith.select %40, %66, %67 : vector<4x256xi1>, vector<4x256xf32>
    %69 = arith.select %40, %67, %66 : vector<4x256xi1>, vector<4x256xf32>
    %70 = arith.select %17, %69, %68 : vector<4x256xi1>, vector<4x256xf32>
    %71 = arith.select %22, %68, %69 : vector<4x256xi1>, vector<4x256xf32>
    %c1_i32_30 = arith.constant 1 : i32
    %72 = tpu.dynamic_rotate %57 by %c1_i32_30 dim 1 : vector<4x256xf32>, i32 -> vector<4x256xf32>
    %c255_i32_31 = arith.constant 255 : i32
    %73 = tpu.dynamic_rotate %57 by %c255_i32_31 dim 1 : vector<4x256xf32>, i32 -> vector<4x256xf32>
    %74 = arith.select %40, %72, %73 : vector<4x256xi1>, vector<4x256xf32>
    %75 = arith.select %40, %73, %72 : vector<4x256xi1>, vector<4x256xf32>
    %76 = arith.select %17, %75, %74 : vector<4x256xi1>, vector<4x256xf32>
    %77 = arith.select %22, %74, %75 : vector<4x256xi1>, vector<4x256xf32>
    %c1_i32_32 = arith.constant 1 : i32
    %78 = tpu.dynamic_rotate %63 by %c1_i32_32 dim 1 : vector<4x256xf32>, i32 -> vector<4x256xf32>
    %c255_i32_33 = arith.constant 255 : i32
    %79 = tpu.dynamic_rotate %63 by %c255_i32_33 dim 1 : vector<4x256xf32>, i32 -> vector<4x256xf32>
    %80 = arith.select %40, %78, %79 : vector<4x256xi1>, vector<4x256xf32>
    %81 = arith.select %40, %79, %78 : vector<4x256xi1>, vector<4x256xf32>
    %82 = arith.select %17, %81, %80 : vector<4x256xi1>, vector<4x256xf32>
    %83 = arith.select %22, %80, %81 : vector<4x256xi1>, vector<4x256xf32>
    %84 = arith.subf %70, %42 : vector<4x256xf32>
    %85 = math.absf %84 : vector<4x256xf32>
    %86 = arith.subf %76, %44 : vector<4x256xf32>
    %87 = math.absf %86 : vector<4x256xf32>
    %88 = arith.addf %85, %87 : vector<4x256xf32>
    %89 = arith.subf %82, %46 : vector<4x256xf32>
    %90 = math.absf %89 : vector<4x256xf32>
    %91 = arith.addf %88, %90 : vector<4x256xf32>
    %92 = arith.mulf %91, %91 : vector<4x256xf32>
    %93 = vector.broadcast %2 : vector<4x1xf32> to vector<4x256xf32>
    %94 = arith.mulf %93, %92 : vector<4x256xf32>
    %95 = vector.broadcast %4 : vector<4x1xf32> to vector<4x256xf32>
    %96 = arith.addf %94, %95 : vector<4x256xf32>
    %97 = math.exp %96 : vector<4x256xf32>
    %98 = arith.addf %65, %97 : vector<4x256xf32>
    %99 = arith.mulf %70, %97 : vector<4x256xf32>
    %100 = arith.addf %42, %99 : vector<4x256xf32>
    %101 = vector.broadcast %6 : vector<4x1xf32> to vector<4x256xf32>
    %102 = arith.mulf %70, %101 : vector<4x256xf32>
    %103 = arith.addf %42, %102 : vector<4x256xf32>
    %104 = arith.mulf %76, %97 : vector<4x256xf32>
    %105 = arith.addf %44, %104 : vector<4x256xf32>
    %106 = vector.broadcast %6 : vector<4x1xf32> to vector<4x256xf32>
    %107 = arith.mulf %76, %106 : vector<4x256xf32>
    %108 = arith.addf %44, %107 : vector<4x256xf32>
    %109 = arith.mulf %82, %97 : vector<4x256xf32>
    %110 = arith.addf %46, %109 : vector<4x256xf32>
    %111 = vector.broadcast %6 : vector<4x1xf32> to vector<4x256xf32>
    %112 = arith.mulf %82, %111 : vector<4x256xf32>
    %113 = arith.addf %46, %112 : vector<4x256xf32>
    %114 = arith.subf %51, %42 : vector<4x256xf32>
    %115 = math.absf %114 : vector<4x256xf32>
    %116 = arith.subf %57, %44 : vector<4x256xf32>
    %117 = math.absf %116 : vector<4x256xf32>
    %118 = arith.addf %115, %117 : vector<4x256xf32>
    %119 = arith.subf %63, %46 : vector<4x256xf32>
    %120 = math.absf %119 : vector<4x256xf32>
    %121 = arith.addf %118, %120 : vector<4x256xf32>
    %122 = arith.mulf %121, %121 : vector<4x256xf32>
    %123 = vector.broadcast %2 : vector<4x1xf32> to vector<4x256xf32>
    %124 = arith.mulf %123, %122 : vector<4x256xf32>
    %125 = vector.broadcast %3 : vector<4x1xf32> to vector<4x256xf32>
    %126 = arith.addf %124, %125 : vector<4x256xf32>
    %127 = math.exp %126 : vector<4x256xf32>
    %128 = arith.addf %98, %127 : vector<4x256xf32>
    %129 = arith.mulf %51, %127 : vector<4x256xf32>
    %130 = arith.addf %100, %129 : vector<4x256xf32>
    %131 = vector.broadcast %5 : vector<4x1xf32> to vector<4x256xf32>
    %132 = arith.mulf %51, %131 : vector<4x256xf32>
    %133 = arith.addf %103, %132 : vector<4x256xf32>
    %134 = arith.mulf %57, %127 : vector<4x256xf32>
    %135 = arith.addf %105, %134 : vector<4x256xf32>
    %136 = vector.broadcast %5 : vector<4x1xf32> to vector<4x256xf32>
    %137 = arith.mulf %57, %136 : vector<4x256xf32>
    %138 = arith.addf %108, %137 : vector<4x256xf32>
    %139 = arith.mulf %63, %127 : vector<4x256xf32>
    %140 = arith.addf %110, %139 : vector<4x256xf32>
    %141 = vector.broadcast %5 : vector<4x1xf32> to vector<4x256xf32>
    %142 = arith.mulf %63, %141 : vector<4x256xf32>
    %143 = arith.addf %113, %142 : vector<4x256xf32>
    %144 = arith.subf %71, %42 : vector<4x256xf32>
    %145 = math.absf %144 : vector<4x256xf32>
    %146 = arith.subf %77, %44 : vector<4x256xf32>
    %147 = math.absf %146 : vector<4x256xf32>
    %148 = arith.addf %145, %147 : vector<4x256xf32>
    %149 = arith.subf %83, %46 : vector<4x256xf32>
    %150 = math.absf %149 : vector<4x256xf32>
    %151 = arith.addf %148, %150 : vector<4x256xf32>
    %152 = arith.mulf %151, %151 : vector<4x256xf32>
    %153 = vector.broadcast %2 : vector<4x1xf32> to vector<4x256xf32>
    %154 = arith.mulf %153, %152 : vector<4x256xf32>
    %155 = vector.broadcast %4 : vector<4x1xf32> to vector<4x256xf32>
    %156 = arith.addf %154, %155 : vector<4x256xf32>
    %157 = math.exp %156 : vector<4x256xf32>
    %158 = arith.addf %128, %157 : vector<4x256xf32>
    %159 = arith.mulf %71, %157 : vector<4x256xf32>
    %160 = arith.addf %130, %159 : vector<4x256xf32>
    %161 = vector.broadcast %6 : vector<4x1xf32> to vector<4x256xf32>
    %162 = arith.mulf %71, %161 : vector<4x256xf32>
    %163 = arith.addf %133, %162 : vector<4x256xf32>
    %164 = arith.mulf %77, %157 : vector<4x256xf32>
    %165 = arith.addf %135, %164 : vector<4x256xf32>
    %166 = vector.broadcast %6 : vector<4x1xf32> to vector<4x256xf32>
    %167 = arith.mulf %77, %166 : vector<4x256xf32>
    %168 = arith.addf %138, %167 : vector<4x256xf32>
    %169 = arith.mulf %83, %157 : vector<4x256xf32>
    %170 = arith.addf %140, %169 : vector<4x256xf32>
    %171 = vector.broadcast %6 : vector<4x1xf32> to vector<4x256xf32>
    %172 = arith.mulf %83, %171 : vector<4x256xf32>
    %173 = arith.addf %143, %172 : vector<4x256xf32>
    %c1_i32_34 = arith.constant 1 : i32
    %174 = tpu.dynamic_rotate %42 by %c1_i32_34 dim 1 : vector<4x256xf32>, i32 -> vector<4x256xf32>
    %c255_i32_35 = arith.constant 255 : i32
    %175 = tpu.dynamic_rotate %42 by %c255_i32_35 dim 1 : vector<4x256xf32>, i32 -> vector<4x256xf32>
    %176 = arith.select %40, %174, %175 : vector<4x256xi1>, vector<4x256xf32>
    %177 = arith.select %40, %175, %174 : vector<4x256xi1>, vector<4x256xf32>
    %178 = arith.select %17, %177, %176 : vector<4x256xi1>, vector<4x256xf32>
    %179 = arith.select %22, %176, %177 : vector<4x256xi1>, vector<4x256xf32>
    %c1_i32_36 = arith.constant 1 : i32
    %180 = tpu.dynamic_rotate %44 by %c1_i32_36 dim 1 : vector<4x256xf32>, i32 -> vector<4x256xf32>
    %c255_i32_37 = arith.constant 255 : i32
    %181 = tpu.dynamic_rotate %44 by %c255_i32_37 dim 1 : vector<4x256xf32>, i32 -> vector<4x256xf32>
    %182 = arith.select %40, %180, %181 : vector<4x256xi1>, vector<4x256xf32>
    %183 = arith.select %40, %181, %180 : vector<4x256xi1>, vector<4x256xf32>
    %184 = arith.select %17, %183, %182 : vector<4x256xi1>, vector<4x256xf32>
    %185 = arith.select %22, %182, %183 : vector<4x256xi1>, vector<4x256xf32>
    %c1_i32_38 = arith.constant 1 : i32
    %186 = tpu.dynamic_rotate %46 by %c1_i32_38 dim 1 : vector<4x256xf32>, i32 -> vector<4x256xf32>
    %c255_i32_39 = arith.constant 255 : i32
    %187 = tpu.dynamic_rotate %46 by %c255_i32_39 dim 1 : vector<4x256xf32>, i32 -> vector<4x256xf32>
    %188 = arith.select %40, %186, %187 : vector<4x256xi1>, vector<4x256xf32>
    %189 = arith.select %40, %187, %186 : vector<4x256xi1>, vector<4x256xf32>
    %190 = arith.select %17, %189, %188 : vector<4x256xi1>, vector<4x256xf32>
    %191 = arith.select %22, %188, %189 : vector<4x256xi1>, vector<4x256xf32>
    %192 = arith.subf %178, %42 : vector<4x256xf32>
    %193 = math.absf %192 : vector<4x256xf32>
    %194 = arith.subf %184, %44 : vector<4x256xf32>
    %195 = math.absf %194 : vector<4x256xf32>
    %196 = arith.addf %193, %195 : vector<4x256xf32>
    %197 = arith.subf %190, %46 : vector<4x256xf32>
    %198 = math.absf %197 : vector<4x256xf32>
    %199 = arith.addf %196, %198 : vector<4x256xf32>
    %200 = arith.mulf %199, %199 : vector<4x256xf32>
    %201 = vector.broadcast %2 : vector<4x1xf32> to vector<4x256xf32>
    %202 = arith.mulf %201, %200 : vector<4x256xf32>
    %203 = vector.broadcast %3 : vector<4x1xf32> to vector<4x256xf32>
    %204 = arith.addf %202, %203 : vector<4x256xf32>
    %205 = math.exp %204 : vector<4x256xf32>
    %206 = arith.addf %158, %205 : vector<4x256xf32>
    %207 = arith.mulf %178, %205 : vector<4x256xf32>
    %208 = arith.addf %160, %207 : vector<4x256xf32>
    %209 = vector.broadcast %5 : vector<4x1xf32> to vector<4x256xf32>
    %210 = arith.mulf %178, %209 : vector<4x256xf32>
    %211 = arith.addf %163, %210 : vector<4x256xf32>
    %212 = arith.mulf %184, %205 : vector<4x256xf32>
    %213 = arith.addf %165, %212 : vector<4x256xf32>
    %214 = vector.broadcast %5 : vector<4x1xf32> to vector<4x256xf32>
    %215 = arith.mulf %184, %214 : vector<4x256xf32>
    %216 = arith.addf %168, %215 : vector<4x256xf32>
    %217 = arith.mulf %190, %205 : vector<4x256xf32>
    %218 = arith.addf %170, %217 : vector<4x256xf32>
    %219 = vector.broadcast %5 : vector<4x1xf32> to vector<4x256xf32>
    %220 = arith.mulf %190, %219 : vector<4x256xf32>
    %221 = arith.addf %173, %220 : vector<4x256xf32>
    %222 = arith.subf %179, %42 : vector<4x256xf32>
    %223 = math.absf %222 : vector<4x256xf32>
    %224 = arith.subf %185, %44 : vector<4x256xf32>
    %225 = math.absf %224 : vector<4x256xf32>
    %226 = arith.addf %223, %225 : vector<4x256xf32>
    %227 = arith.subf %191, %46 : vector<4x256xf32>
    %228 = math.absf %227 : vector<4x256xf32>
    %229 = arith.addf %226, %228 : vector<4x256xf32>
    %230 = arith.mulf %229, %229 : vector<4x256xf32>
    %231 = vector.broadcast %2 : vector<4x1xf32> to vector<4x256xf32>
    %232 = arith.mulf %231, %230 : vector<4x256xf32>
    %233 = vector.broadcast %3 : vector<4x1xf32> to vector<4x256xf32>
    %234 = arith.addf %232, %233 : vector<4x256xf32>
    %235 = math.exp %234 : vector<4x256xf32>
    %236 = arith.addf %206, %235 : vector<4x256xf32>
    %237 = arith.mulf %179, %235 : vector<4x256xf32>
    %238 = arith.addf %208, %237 : vector<4x256xf32>
    %239 = vector.broadcast %5 : vector<4x1xf32> to vector<4x256xf32>
    %240 = arith.mulf %179, %239 : vector<4x256xf32>
    %241 = arith.addf %211, %240 : vector<4x256xf32>
    %242 = arith.mulf %185, %235 : vector<4x256xf32>
    %243 = arith.addf %213, %242 : vector<4x256xf32>
    %244 = vector.broadcast %5 : vector<4x1xf32> to vector<4x256xf32>
    %245 = arith.mulf %185, %244 : vector<4x256xf32>
    %246 = arith.addf %216, %245 : vector<4x256xf32>
    %247 = arith.mulf %191, %235 : vector<4x256xf32>
    %248 = arith.addf %218, %247 : vector<4x256xf32>
    %249 = vector.broadcast %5 : vector<4x1xf32> to vector<4x256xf32>
    %250 = arith.mulf %191, %249 : vector<4x256xf32>
    %251 = arith.addf %221, %250 : vector<4x256xf32>
    %c1_i32_40 = arith.constant 1 : i32
    %252 = tpu.dynamic_rotate %52 by %c1_i32_40 dim 1 : vector<4x256xf32>, i32 -> vector<4x256xf32>
    %c255_i32_41 = arith.constant 255 : i32
    %253 = tpu.dynamic_rotate %52 by %c255_i32_41 dim 1 : vector<4x256xf32>, i32 -> vector<4x256xf32>
    %254 = arith.select %40, %252, %253 : vector<4x256xi1>, vector<4x256xf32>
    %255 = arith.select %40, %253, %252 : vector<4x256xi1>, vector<4x256xf32>
    %256 = arith.select %17, %255, %254 : vector<4x256xi1>, vector<4x256xf32>
    %257 = arith.select %22, %254, %255 : vector<4x256xi1>, vector<4x256xf32>
    %c1_i32_42 = arith.constant 1 : i32
    %258 = tpu.dynamic_rotate %58 by %c1_i32_42 dim 1 : vector<4x256xf32>, i32 -> vector<4x256xf32>
    %c255_i32_43 = arith.constant 255 : i32
    %259 = tpu.dynamic_rotate %58 by %c255_i32_43 dim 1 : vector<4x256xf32>, i32 -> vector<4x256xf32>
    %260 = arith.select %40, %258, %259 : vector<4x256xi1>, vector<4x256xf32>
    %261 = arith.select %40, %259, %258 : vector<4x256xi1>, vector<4x256xf32>
    %262 = arith.select %17, %261, %260 : vector<4x256xi1>, vector<4x256xf32>
    %263 = arith.select %22, %260, %261 : vector<4x256xi1>, vector<4x256xf32>
    %c1_i32_44 = arith.constant 1 : i32
    %264 = tpu.dynamic_rotate %64 by %c1_i32_44 dim 1 : vector<4x256xf32>, i32 -> vector<4x256xf32>
    %c255_i32_45 = arith.constant 255 : i32
    %265 = tpu.dynamic_rotate %64 by %c255_i32_45 dim 1 : vector<4x256xf32>, i32 -> vector<4x256xf32>
    %266 = arith.select %40, %264, %265 : vector<4x256xi1>, vector<4x256xf32>
    %267 = arith.select %40, %265, %264 : vector<4x256xi1>, vector<4x256xf32>
    %268 = arith.select %17, %267, %266 : vector<4x256xi1>, vector<4x256xf32>
    %269 = arith.select %22, %266, %267 : vector<4x256xi1>, vector<4x256xf32>
    %270 = arith.subf %256, %42 : vector<4x256xf32>
    %271 = math.absf %270 : vector<4x256xf32>
    %272 = arith.subf %262, %44 : vector<4x256xf32>
    %273 = math.absf %272 : vector<4x256xf32>
    %274 = arith.addf %271, %273 : vector<4x256xf32>
    %275 = arith.subf %268, %46 : vector<4x256xf32>
    %276 = math.absf %275 : vector<4x256xf32>
    %277 = arith.addf %274, %276 : vector<4x256xf32>
    %278 = arith.mulf %277, %277 : vector<4x256xf32>
    %279 = vector.broadcast %2 : vector<4x1xf32> to vector<4x256xf32>
    %280 = arith.mulf %279, %278 : vector<4x256xf32>
    %281 = vector.broadcast %4 : vector<4x1xf32> to vector<4x256xf32>
    %282 = arith.addf %280, %281 : vector<4x256xf32>
    %283 = math.exp %282 : vector<4x256xf32>
    %284 = arith.addf %236, %283 : vector<4x256xf32>
    %285 = arith.mulf %256, %283 : vector<4x256xf32>
    %286 = arith.addf %238, %285 : vector<4x256xf32>
    %287 = vector.broadcast %6 : vector<4x1xf32> to vector<4x256xf32>
    %288 = arith.mulf %256, %287 : vector<4x256xf32>
    %289 = arith.addf %241, %288 : vector<4x256xf32>
    %290 = arith.mulf %262, %283 : vector<4x256xf32>
    %291 = arith.addf %243, %290 : vector<4x256xf32>
    %292 = vector.broadcast %6 : vector<4x1xf32> to vector<4x256xf32>
    %293 = arith.mulf %262, %292 : vector<4x256xf32>
    %294 = arith.addf %246, %293 : vector<4x256xf32>
    %295 = arith.mulf %268, %283 : vector<4x256xf32>
    %296 = arith.addf %248, %295 : vector<4x256xf32>
    %297 = vector.broadcast %6 : vector<4x1xf32> to vector<4x256xf32>
    %298 = arith.mulf %268, %297 : vector<4x256xf32>
    %299 = arith.addf %251, %298 : vector<4x256xf32>
    %300 = arith.subf %52, %42 : vector<4x256xf32>
    %301 = math.absf %300 : vector<4x256xf32>
    %302 = arith.subf %58, %44 : vector<4x256xf32>
    %303 = math.absf %302 : vector<4x256xf32>
    %304 = arith.addf %301, %303 : vector<4x256xf32>
    %305 = arith.subf %64, %46 : vector<4x256xf32>
    %306 = math.absf %305 : vector<4x256xf32>
    %307 = arith.addf %304, %306 : vector<4x256xf32>
    %308 = arith.mulf %307, %307 : vector<4x256xf32>
    %309 = vector.broadcast %2 : vector<4x1xf32> to vector<4x256xf32>
    %310 = arith.mulf %309, %308 : vector<4x256xf32>
    %311 = vector.broadcast %3 : vector<4x1xf32> to vector<4x256xf32>
    %312 = arith.addf %310, %311 : vector<4x256xf32>
    %313 = math.exp %312 : vector<4x256xf32>
    %314 = arith.addf %284, %313 : vector<4x256xf32>
    %315 = arith.mulf %52, %313 : vector<4x256xf32>
    %316 = arith.addf %286, %315 : vector<4x256xf32>
    %317 = vector.broadcast %5 : vector<4x1xf32> to vector<4x256xf32>
    %318 = arith.mulf %52, %317 : vector<4x256xf32>
    %319 = arith.addf %289, %318 : vector<4x256xf32>
    %320 = arith.mulf %58, %313 : vector<4x256xf32>
    %321 = arith.addf %291, %320 : vector<4x256xf32>
    %322 = vector.broadcast %5 : vector<4x1xf32> to vector<4x256xf32>
    %323 = arith.mulf %58, %322 : vector<4x256xf32>
    %324 = arith.addf %294, %323 : vector<4x256xf32>
    %325 = arith.mulf %64, %313 : vector<4x256xf32>
    %326 = arith.addf %296, %325 : vector<4x256xf32>
    %327 = vector.broadcast %5 : vector<4x1xf32> to vector<4x256xf32>
    %328 = arith.mulf %64, %327 : vector<4x256xf32>
    %329 = arith.addf %299, %328 : vector<4x256xf32>
    %330 = arith.subf %257, %42 : vector<4x256xf32>
    %331 = math.absf %330 : vector<4x256xf32>
    %332 = arith.subf %263, %44 : vector<4x256xf32>
    %333 = math.absf %332 : vector<4x256xf32>
    %334 = arith.addf %331, %333 : vector<4x256xf32>
    %335 = arith.subf %269, %46 : vector<4x256xf32>
    %336 = math.absf %335 : vector<4x256xf32>
    %337 = arith.addf %334, %336 : vector<4x256xf32>
    %338 = arith.mulf %337, %337 : vector<4x256xf32>
    %339 = vector.broadcast %2 : vector<4x1xf32> to vector<4x256xf32>
    %340 = arith.mulf %339, %338 : vector<4x256xf32>
    %341 = vector.broadcast %4 : vector<4x1xf32> to vector<4x256xf32>
    %342 = arith.addf %340, %341 : vector<4x256xf32>
    %343 = math.exp %342 : vector<4x256xf32>
    %344 = arith.addf %314, %343 : vector<4x256xf32>
    %345 = arith.mulf %257, %343 : vector<4x256xf32>
    %346 = arith.addf %316, %345 : vector<4x256xf32>
    %347 = vector.broadcast %6 : vector<4x1xf32> to vector<4x256xf32>
    %348 = arith.mulf %257, %347 : vector<4x256xf32>
    %349 = arith.addf %319, %348 : vector<4x256xf32>
    %350 = arith.mulf %263, %343 : vector<4x256xf32>
    %351 = arith.addf %321, %350 : vector<4x256xf32>
    %352 = vector.broadcast %6 : vector<4x1xf32> to vector<4x256xf32>
    %353 = arith.mulf %263, %352 : vector<4x256xf32>
    %354 = arith.addf %324, %353 : vector<4x256xf32>
    %355 = arith.mulf %269, %343 : vector<4x256xf32>
    %356 = arith.addf %326, %355 : vector<4x256xf32>
    %357 = vector.broadcast %6 : vector<4x1xf32> to vector<4x256xf32>
    %358 = arith.mulf %269, %357 : vector<4x256xf32>
    %359 = arith.addf %329, %358 : vector<4x256xf32>
    %cst_46 = arith.constant 1.000000e+00 : f32
    %360 = vector.broadcast %cst_46 : f32 to vector<4x256xf32>
    %361 = arith.divf %360, %344 : vector<4x256xf32>
    %cst_47 = arith.constant 0.000000e+00 : f32
    %362 = vector.broadcast %cst_47 : f32 to vector<4x1xf32>
    %cst_48 = arith.constant 0.000000e+00 : f32
    %363 = vector.broadcast %cst_48 : f32 to vector<4x1xf32>
    %364 = arith.mulf %346, %361 : vector<4x256xf32>
    %365 = vector.broadcast %7 : vector<4x1xf32> to vector<4x256xf32>
    %366 = arith.mulf %349, %365 : vector<4x256xf32>
    %367 = arith.subf %42, %366 : vector<4x256xf32>
    %368 = math.absf %367 : vector<4x256xf32>
    %369 = vector.broadcast %11 : vector<4x1xf32> to vector<4x256xf32>
    %370 = arith.addf %42, %369 : vector<4x256xf32>
    %cst_49 = arith.constant 9.99999974E-6 : f32
    %371 = vector.broadcast %cst_49 : f32 to vector<4x256xf32>
    %372 = arith.maximumf %370, %371 : vector<4x256xf32>
    %373 = vector.broadcast %10 : vector<4x1xf32> to vector<4x256xf32>
    %374 = arith.mulf %368, %373 : vector<4x256xf32>
    %375 = arith.divf %374, %372 : vector<4x256xf32>
    %cst_50 = arith.constant 1.000000e+01 : f32
    %376 = vector.broadcast %cst_50 : f32 to vector<4x256xf32>
    %377 = arith.minimumf %375, %376 : vector<4x256xf32>
    %378 = vector.broadcast %9 : vector<4x1xf32> to vector<4x256xf32>
    %379 = arith.mulf %377, %378 : vector<4x256xf32>
    %380 = arith.mulf %379, %379 : vector<4x256xf32>
    %cst_51 = arith.constant 0.000000e+00 : f32
    %381 = vector.broadcast %cst_51 : f32 to vector<4x256xf32>
    %382 = arith.subf %381, %380 : vector<4x256xf32>
    %cst_52 = arith.constant -8.800000e+01 : f32
    %383 = vector.broadcast %cst_52 : f32 to vector<4x256xf32>
    %384 = arith.maximumf %382, %383 : vector<4x256xf32>
    %385 = math.exp %384 : vector<4x256xf32>
    %cst_53 = arith.constant 1.000000e+00 : f32
    %386 = vector.broadcast %cst_53 : f32 to vector<4x256xf32>
    %387 = arith.subf %386, %385 : vector<4x256xf32>
    %388 = arith.mulf %387, %387 : vector<4x256xf32>
    %cst_54 = arith.constant 2.000000e-03 : f32
    %389 = vector.broadcast %cst_54 : f32 to vector<4x256xf32>
    %390 = arith.subf %368, %389 : vector<4x256xf32>
    %391 = vector.broadcast %12 : vector<4x1xf32> to vector<4x256xf32>
    %392 = arith.mulf %391, %390 : vector<4x256xf32>
    %393 = math.absf %392 : vector<4x256xf32>
    %cst_55 = arith.constant 0.000000e+00 : f32
    %394 = vector.broadcast %cst_55 : f32 to vector<4x256xf32>
    %395 = arith.subf %394, %393 : vector<4x256xf32>
    %396 = math.exp %395 : vector<4x256xf32>
    %cst_56 = arith.constant 1.000000e+00 : f32
    %397 = vector.broadcast %cst_56 : f32 to vector<4x256xf32>
    %398 = arith.addf %397, %396 : vector<4x256xf32>
    %cst_57 = arith.constant 1.000000e+00 : f32
    %399 = vector.broadcast %cst_57 : f32 to vector<4x256xf32>
    %400 = arith.divf %399, %398 : vector<4x256xf32>
    %cst_58 = arith.constant 0.000000e+00 : f32
    %401 = vector.broadcast %cst_58 : f32 to vector<4x256xf32>
    %402 = arith.cmpf oge, %392, %401 : vector<4x256xf32>
    %403 = arith.mulf %396, %400 : vector<4x256xf32>
    %404 = arith.select %402, %400, %403 : vector<4x256xi1>, vector<4x256xf32>
    %cst_59 = arith.constant dense<0.000000e+00> : vector<4xf32>
    %405 = vector.multi_reduction <add>, %377, %cst_59 [1] : vector<4x256xf32> to vector<4xf32>
    %406 = vector.shape_cast %405 : vector<4xf32> to vector<4x1xf32>
    %407 = arith.addf %362, %406 : vector<4x1xf32>
    %cst_60 = arith.constant dense<0.000000e+00> : vector<4xf32>
    %408 = vector.multi_reduction <add>, %368, %cst_60 [1] : vector<4x256xf32> to vector<4xf32>
    %409 = vector.shape_cast %408 : vector<4xf32> to vector<4x1xf32>
    %410 = arith.addf %363, %409 : vector<4x1xf32>
    %411 = vector.broadcast %8 : vector<4x1xf32> to vector<4x256xf32>
    %412 = arith.mulf %411, %367 : vector<4x256xf32>
    %413 = arith.mulf %412, %388 : vector<4x256xf32>
    %414 = arith.mulf %413, %404 : vector<4x256xf32>
    %415 = arith.addf %364, %414 : vector<4x256xf32>
    %416 = arith.mulf %351, %361 : vector<4x256xf32>
    %417 = vector.broadcast %7 : vector<4x1xf32> to vector<4x256xf32>
    %418 = arith.mulf %354, %417 : vector<4x256xf32>
    %419 = arith.subf %44, %418 : vector<4x256xf32>
    %420 = math.absf %419 : vector<4x256xf32>
    %421 = vector.broadcast %11 : vector<4x1xf32> to vector<4x256xf32>
    %422 = arith.addf %44, %421 : vector<4x256xf32>
    %cst_61 = arith.constant 9.99999974E-6 : f32
    %423 = vector.broadcast %cst_61 : f32 to vector<4x256xf32>
    %424 = arith.maximumf %422, %423 : vector<4x256xf32>
    %425 = vector.broadcast %10 : vector<4x1xf32> to vector<4x256xf32>
    %426 = arith.mulf %420, %425 : vector<4x256xf32>
    %427 = arith.divf %426, %424 : vector<4x256xf32>
    %cst_62 = arith.constant 1.000000e+01 : f32
    %428 = vector.broadcast %cst_62 : f32 to vector<4x256xf32>
    %429 = arith.minimumf %427, %428 : vector<4x256xf32>
    %430 = vector.broadcast %9 : vector<4x1xf32> to vector<4x256xf32>
    %431 = arith.mulf %429, %430 : vector<4x256xf32>
    %432 = arith.mulf %431, %431 : vector<4x256xf32>
    %cst_63 = arith.constant 0.000000e+00 : f32
    %433 = vector.broadcast %cst_63 : f32 to vector<4x256xf32>
    %434 = arith.subf %433, %432 : vector<4x256xf32>
    %cst_64 = arith.constant -8.800000e+01 : f32
    %435 = vector.broadcast %cst_64 : f32 to vector<4x256xf32>
    %436 = arith.maximumf %434, %435 : vector<4x256xf32>
    %437 = math.exp %436 : vector<4x256xf32>
    %cst_65 = arith.constant 1.000000e+00 : f32
    %438 = vector.broadcast %cst_65 : f32 to vector<4x256xf32>
    %439 = arith.subf %438, %437 : vector<4x256xf32>
    %440 = arith.mulf %439, %439 : vector<4x256xf32>
    %cst_66 = arith.constant 2.000000e-03 : f32
    %441 = vector.broadcast %cst_66 : f32 to vector<4x256xf32>
    %442 = arith.subf %420, %441 : vector<4x256xf32>
    %443 = vector.broadcast %12 : vector<4x1xf32> to vector<4x256xf32>
    %444 = arith.mulf %443, %442 : vector<4x256xf32>
    %445 = math.absf %444 : vector<4x256xf32>
    %cst_67 = arith.constant 0.000000e+00 : f32
    %446 = vector.broadcast %cst_67 : f32 to vector<4x256xf32>
    %447 = arith.subf %446, %445 : vector<4x256xf32>
    %448 = math.exp %447 : vector<4x256xf32>
    %cst_68 = arith.constant 1.000000e+00 : f32
    %449 = vector.broadcast %cst_68 : f32 to vector<4x256xf32>
    %450 = arith.addf %449, %448 : vector<4x256xf32>
    %cst_69 = arith.constant 1.000000e+00 : f32
    %451 = vector.broadcast %cst_69 : f32 to vector<4x256xf32>
    %452 = arith.divf %451, %450 : vector<4x256xf32>
    %cst_70 = arith.constant 0.000000e+00 : f32
    %453 = vector.broadcast %cst_70 : f32 to vector<4x256xf32>
    %454 = arith.cmpf oge, %444, %453 : vector<4x256xf32>
    %455 = arith.mulf %448, %452 : vector<4x256xf32>
    %456 = arith.select %454, %452, %455 : vector<4x256xi1>, vector<4x256xf32>
    %cst_71 = arith.constant dense<0.000000e+00> : vector<4xf32>
    %457 = vector.multi_reduction <add>, %429, %cst_71 [1] : vector<4x256xf32> to vector<4xf32>
    %458 = vector.shape_cast %457 : vector<4xf32> to vector<4x1xf32>
    %459 = arith.addf %407, %458 : vector<4x1xf32>
    %cst_72 = arith.constant dense<0.000000e+00> : vector<4xf32>
    %460 = vector.multi_reduction <add>, %420, %cst_72 [1] : vector<4x256xf32> to vector<4xf32>
    %461 = vector.shape_cast %460 : vector<4xf32> to vector<4x1xf32>
    %462 = arith.addf %410, %461 : vector<4x1xf32>
    %463 = vector.broadcast %8 : vector<4x1xf32> to vector<4x256xf32>
    %464 = arith.mulf %463, %419 : vector<4x256xf32>
    %465 = arith.mulf %464, %440 : vector<4x256xf32>
    %466 = arith.mulf %465, %456 : vector<4x256xf32>
    %467 = arith.addf %416, %466 : vector<4x256xf32>
    %468 = arith.mulf %356, %361 : vector<4x256xf32>
    %469 = vector.broadcast %7 : vector<4x1xf32> to vector<4x256xf32>
    %470 = arith.mulf %359, %469 : vector<4x256xf32>
    %471 = arith.subf %46, %470 : vector<4x256xf32>
    %472 = math.absf %471 : vector<4x256xf32>
    %473 = vector.broadcast %11 : vector<4x1xf32> to vector<4x256xf32>
    %474 = arith.addf %46, %473 : vector<4x256xf32>
    %cst_73 = arith.constant 9.99999974E-6 : f32
    %475 = vector.broadcast %cst_73 : f32 to vector<4x256xf32>
    %476 = arith.maximumf %474, %475 : vector<4x256xf32>
    %477 = vector.broadcast %10 : vector<4x1xf32> to vector<4x256xf32>
    %478 = arith.mulf %472, %477 : vector<4x256xf32>
    %479 = arith.divf %478, %476 : vector<4x256xf32>
    %cst_74 = arith.constant 1.000000e+01 : f32
    %480 = vector.broadcast %cst_74 : f32 to vector<4x256xf32>
    %481 = arith.minimumf %479, %480 : vector<4x256xf32>
    %482 = vector.broadcast %9 : vector<4x1xf32> to vector<4x256xf32>
    %483 = arith.mulf %481, %482 : vector<4x256xf32>
    %484 = arith.mulf %483, %483 : vector<4x256xf32>
    %cst_75 = arith.constant 0.000000e+00 : f32
    %485 = vector.broadcast %cst_75 : f32 to vector<4x256xf32>
    %486 = arith.subf %485, %484 : vector<4x256xf32>
    %cst_76 = arith.constant -8.800000e+01 : f32
    %487 = vector.broadcast %cst_76 : f32 to vector<4x256xf32>
    %488 = arith.maximumf %486, %487 : vector<4x256xf32>
    %489 = math.exp %488 : vector<4x256xf32>
    %cst_77 = arith.constant 1.000000e+00 : f32
    %490 = vector.broadcast %cst_77 : f32 to vector<4x256xf32>
    %491 = arith.subf %490, %489 : vector<4x256xf32>
    %492 = arith.mulf %491, %491 : vector<4x256xf32>
    %cst_78 = arith.constant 2.000000e-03 : f32
    %493 = vector.broadcast %cst_78 : f32 to vector<4x256xf32>
    %494 = arith.subf %472, %493 : vector<4x256xf32>
    %495 = vector.broadcast %12 : vector<4x1xf32> to vector<4x256xf32>
    %496 = arith.mulf %495, %494 : vector<4x256xf32>
    %497 = math.absf %496 : vector<4x256xf32>
    %cst_79 = arith.constant 0.000000e+00 : f32
    %498 = vector.broadcast %cst_79 : f32 to vector<4x256xf32>
    %499 = arith.subf %498, %497 : vector<4x256xf32>
    %500 = math.exp %499 : vector<4x256xf32>
    %cst_80 = arith.constant 1.000000e+00 : f32
    %501 = vector.broadcast %cst_80 : f32 to vector<4x256xf32>
    %502 = arith.addf %501, %500 : vector<4x256xf32>
    %cst_81 = arith.constant 1.000000e+00 : f32
    %503 = vector.broadcast %cst_81 : f32 to vector<4x256xf32>
    %504 = arith.divf %503, %502 : vector<4x256xf32>
    %cst_82 = arith.constant 0.000000e+00 : f32
    %505 = vector.broadcast %cst_82 : f32 to vector<4x256xf32>
    %506 = arith.cmpf oge, %496, %505 : vector<4x256xf32>
    %507 = arith.mulf %500, %504 : vector<4x256xf32>
    %508 = arith.select %506, %504, %507 : vector<4x256xi1>, vector<4x256xf32>
    %cst_83 = arith.constant dense<0.000000e+00> : vector<4xf32>
    %509 = vector.multi_reduction <add>, %481, %cst_83 [1] : vector<4x256xf32> to vector<4xf32>
    %510 = vector.shape_cast %509 : vector<4xf32> to vector<4x1xf32>
    %511 = arith.addf %459, %510 : vector<4x1xf32>
    %cst_84 = arith.constant dense<0.000000e+00> : vector<4xf32>
    %512 = vector.multi_reduction <add>, %472, %cst_84 [1] : vector<4x256xf32> to vector<4xf32>
    %513 = vector.shape_cast %512 : vector<4xf32> to vector<4x1xf32>
    %514 = arith.addf %462, %513 : vector<4x1xf32>
    %515 = vector.broadcast %8 : vector<4x1xf32> to vector<4x256xf32>
    %516 = arith.mulf %515, %471 : vector<4x256xf32>
    %517 = arith.mulf %516, %492 : vector<4x256xf32>
    %518 = arith.mulf %517, %508 : vector<4x256xf32>
    %519 = arith.addf %468, %518 : vector<4x256xf32>
    %cst_85 = arith.constant 0.00130208337 : f32
    %520 = vector.broadcast %cst_85 : f32 to vector<4x1xf32>
    %521 = arith.mulf %511, %520 : vector<4x1xf32>
    %522 = vector.shape_cast %521 : vector<4x1xf32> to vector<4x1xf32>
    %523 = vector.broadcast %522 : vector<4x1xf32> to vector<4x256xf32>
    %cst_86 = arith.constant 9.99999974E-5 : f32
    %524 = vector.broadcast %cst_86 : f32 to vector<4x256xf32>
    %525 = arith.cmpf olt, %523, %524 : vector<4x256xf32>
    %cst_87 = arith.constant 0.00130208337 : f32
    %526 = vector.broadcast %cst_87 : f32 to vector<4x1xf32>
    %527 = arith.mulf %514, %526 : vector<4x1xf32>
    %528 = vector.shape_cast %527 : vector<4x1xf32> to vector<4x1xf32>
    %529 = vector.broadcast %528 : vector<4x1xf32> to vector<4x256xf32>
    %cst_88 = arith.constant 9.99999974E-5 : f32
    %530 = vector.broadcast %cst_88 : f32 to vector<4x256xf32>
    %531 = arith.cmpf olt, %529, %530 : vector<4x256xf32>
    %532 = arith.ori %525, %531 : vector<4x256xi1>
    %533 = arith.select %532, %42, %415 : vector<4x256xi1>, vector<4x256xf32>
    %cst_89 = arith.constant 9.99999974E-6 : f32
    %cst_90 = arith.constant 1.000000e+00 : f32
    %534 = vector.broadcast %cst_89 : f32 to vector<4x256xf32>
    %535 = arith.maximumf %534, %533 : vector<4x256xf32>
    %536 = vector.broadcast %cst_90 : f32 to vector<4x256xf32>
    %537 = arith.minimumf %536, %535 : vector<4x256xf32>
    %c0_91 = arith.constant 0 : index
    %c0_92 = arith.constant 0 : index
    %c0_93 = arith.constant 0 : index
    %c0_94 = arith.constant 0 : index
    %538 = vector.load %arg4[%c0_91, %c0_92, %c0_93, %c0_94] : memref<3x1x4x256xf32, #tpu.memory_space<vmem>>, vector<1x1x4x256xf32>
    %539 = vector.shape_cast %538 : vector<1x1x4x256xf32> to vector<4x256xf32>
    %540 = vector.shape_cast %537 : vector<4x256xf32> to vector<1x1x4x256xf32>
    tpu.vector_store %arg4[%c0_91, %c0_92, %c0_93, %c0_94], %540 {strides = array<i32>} : memref<3x1x4x256xf32, #tpu.memory_space<vmem>>, vector<1x1x4x256xf32>,
    %541 = arith.select %532, %44, %467 : vector<4x256xi1>, vector<4x256xf32>
    %cst_95 = arith.constant 9.99999974E-6 : f32
    %cst_96 = arith.constant 1.000000e+00 : f32
    %542 = vector.broadcast %cst_95 : f32 to vector<4x256xf32>
    %543 = arith.maximumf %542, %541 : vector<4x256xf32>
    %544 = vector.broadcast %cst_96 : f32 to vector<4x256xf32>
    %545 = arith.minimumf %544, %543 : vector<4x256xf32>
    %c1_97 = arith.constant 1 : index
    %c0_98 = arith.constant 0 : index
    %c0_99 = arith.constant 0 : index
    %c0_100 = arith.constant 0 : index
    %546 = vector.load %arg4[%c1_97, %c0_98, %c0_99, %c0_100] : memref<3x1x4x256xf32, #tpu.memory_space<vmem>>, vector<1x1x4x256xf32>
    %547 = vector.shape_cast %546 : vector<1x1x4x256xf32> to vector<4x256xf32>
    %548 = vector.shape_cast %545 : vector<4x256xf32> to vector<1x1x4x256xf32>
    tpu.vector_store %arg4[%c1_97, %c0_98, %c0_99, %c0_100], %548 {strides = array<i32>} : memref<3x1x4x256xf32, #tpu.memory_space<vmem>>, vector<1x1x4x256xf32>,
    %549 = arith.select %532, %46, %519 : vector<4x256xi1>, vector<4x256xf32>
    %cst_101 = arith.constant 9.99999974E-6 : f32
    %cst_102 = arith.constant 1.000000e+00 : f32
    %550 = vector.broadcast %cst_101 : f32 to vector<4x256xf32>
    %551 = arith.maximumf %550, %549 : vector<4x256xf32>
    %552 = vector.broadcast %cst_102 : f32 to vector<4x256xf32>
    %553 = arith.minimumf %552, %551 : vector<4x256xf32>
    %c2_103 = arith.constant 2 : index
    %c0_104 = arith.constant 0 : index
    %c0_105 = arith.constant 0 : index
    %c0_106 = arith.constant 0 : index
    %554 = vector.load %arg4[%c2_103, %c0_104, %c0_105, %c0_106] : memref<3x1x4x256xf32, #tpu.memory_space<vmem>>, vector<1x1x4x256xf32>
    %555 = vector.shape_cast %554 : vector<1x1x4x256xf32> to vector<4x256xf32>
    %556 = vector.shape_cast %553 : vector<4x256xf32> to vector<1x1x4x256xf32>
    tpu.vector_store %arg4[%c2_103, %c0_104, %c0_105, %c0_106], %556 {strides = array<i32>} : memref<3x1x4x256xf32, #tpu.memory_space<vmem>>, vector<1x1x4x256xf32>,
    return
  }
  func.func @transform_0(%arg0: i32) -> (i32, i32, i32) {
    %c0_i32 = arith.constant 0 : i32
    %c0_i32_0 = arith.constant 0 : i32
    %c0_i32_1 = arith.constant 0 : i32
    return %arg0, %c0_i32, %c0_i32_0 : i32, i32, i32
  }
  func.func @transform_1(%arg0: i32) -> (i32, i32) {
    %c0_i32 = arith.constant 0 : i32
    %c0_i32_0 = arith.constant 0 : i32
    %c0_i32_1 = arith.constant 0 : i32
    return %c0_i32, %c0_i32_0 : i32, i32
  }
  func.func @transform_2(%arg0: i32) -> (i32, i32, i32, i32) {
    %c0_i32 = arith.constant 0 : i32
    %c0_i32_0 = arith.constant 0 : i32
    %c0_i32_1 = arith.constant 0 : i32
    %c0_i32_2 = arith.constant 0 : i32
    return %c0_i32, %arg0, %c0_i32_0, %c0_i32_1 : i32, i32, i32, i32
  }
  func.func @transform_3(%arg0: i32) -> (i32, i32, i32, i32) {
    %c0_i32 = arith.constant 0 : i32
    %c0_i32_0 = arith.constant 0 : i32
    %c0_i32_1 = arith.constant 0 : i32
    %c0_i32_2 = arith.constant 0 : i32
    return %c0_i32, %arg0, %c0_i32_0, %c0_i32_1 : i32, i32, i32, i32
  }
}

</mosaic_0001>

<bundles_post_ra>
// kernel: tpu_custom_call.1
= control target key start
LH: loop header
LB: loop body
LE: loop exit
PB: predicated region body
PF: predicated region fallthrough
CT: control target
= control target key end

     0   :  { %8 = vsyncpa [#allocation3], 0  ;;  %s3668_s0 = inlined_call_operand.hbm [shape: f32[2,4,11], index: 0, kind: input, shape index: {}]   ;;  %s3669_s1 = inlined_call_operand.hbm [shape: f32[6,256], index: 1, kind: input, shape index: {}]   ;;  %s3670_s2 = inlined_call_operand.hbm [shape: f32[3,2,4,256], index: 2, kind: input, shape index: {}]   ;;  %s3671_s3 = inlined_call_operand.hbm [shape: f32[3,2,4,256], index: 3, kind: output, shape index: {}]  }
   0x1   :  { %10 = vsyncpa [#allocation3 + $0x1], 0 }
   0x2   :  { %11 = vsyncpa [#allocation6], 0 }
   0x3   :  { %12 = vsyncpa [#allocation4], 0 }
   0x4   :  { %14 = vsyncpa [#allocation4 + $0x1], 0  ;;  %s2053_s12 = smov 0   ;;  %s2055_s13 = smov 0  }
   0x5   :  { %s2057_s14 = smov 0   ;;  %s2059_s15 = smov 0  }
   0x6 LB: > { %s2074_s16 = sadd.s32 1, %s2005_s15   ;;  %s27_s17 = sadd.s32 1, %s2001_s14  ;;  %s2005_s15 = sphi %s2059_s15, %s3976_s15   ;;  %s2001_s14 = sphi %s2057_s14, %s3975_s14   ;;  %s1997_s13 = sphi %s2055_s13, %s3974_s13   ;;  %s1993_s12 = sphi %s2053_s12, %s3973_s12  }
   0x7   : > { %s24_s18 = ssub.s32 %s2005_s15, %s2074_s16  ;;  %p34_p0 = scmp.ne.s32.totalorder %s2001_s14, %s1997_s13 }
   0x8   : > { %p25_p1 = scmp.eq.s32.totalorder %s24_s18, 0  ;;  %p35_p2 = scmp.eq.s32.totalorder %s2005_s15, 0 }
   0x9   : > { %p1695_p4 = scmp.lt.s32.totalorder %s2005_s15, 2  ;;  %s148_s20 = sand.u32 1, %s2005_s15  }
   0xa   : > { %s2085_s19 = scalar_select %p25_p1, %s2001_s14, %s27_s17  }
   0xb   : > { %p36_p5 = por %p35_p2, %p34_p0  ;;  %s150_s21 = sand.u32 1, %s2001_s14  }
   0xc   : > { %s1647_s22 = sshll.u32 %s150_s21, 2  ;;  %s1648_s23 = sshll.u32 %s2005_s15, 6 }
   0xd   : > { %s2096_s26 = scalar_lea.hbm %s3668_s0, %s1648_s23  ;;  %s152_s27 = scalar_lea.vmem [#allocation2], %s1647_s22 }
   0xe   : > { %s159_s28 = sshll.u32 %s152_s27, 4  ;;  %p2098_p6 = pnand %p1695_p4, %p36_p5  ;;  %s2102_s28 = int_to_ptr.vmem [resolvable:$true] %s159_s28 }
   0xf   : > { %s2104_s30 = smul.u32 24, %s150_s21  ;;  %s2106_s4 = scalar_lea.sflag [#allocation3], %s148_s20 }
  0x10   : > { %s1843_s5 = scalar_lea.hbm %s2096_s26, 64  ;;  %p1845_p8 = pneg %p2098_p6 }
  0x11   : > { %p1844_p7 = scmp.ne.s32.totalorder %s2096_s26, %s1843_s5  ;;  %s1848_s8 = scalar_lea.hbm %s3668_s0, 128 }
  0x12   : > { %p1849_p11 = scmp.lt.u32.totalorder %s2096_s26, %s3668_s0  ;;  %p1850_p12 = scmp.lt.u32.totalorder %s1848_s8, %s1843_s5 }
  0x13   : > { %p1846_p9 = pnand %p1845_p8, %p1844_p7  ;;  %p1852_p1 = scmp.lt.u32.totalorder %s1843_s5, %s2096_s26 }
  0x14   : > { %p1851_p13 = por %p1850_p12, %p1849_p11 }
  0x15   : > { %p1847_p10 = pneg %p1846_p9 }
  0x16   : > { %p1853_p2 = por %p1852_p1, %p1851_p13 }
  0x18   : > { %p1854_p4 = pnand %p1853_p2, %p1847_p10 }
  0x1a   : > { %1857 = shalt.err (!%p1854_p4)
}
  0x1b   : > { %s1858_s11 = scalar_lea.vmem %s2102_s28, 64  ;;  %s2007_s17 = smov [#allocation2]  }
  0x1c   : > { %p1859_p5 = scmp.ne.s32.totalorder %s2102_s28, %s1858_s11  ;;  %s1863_s18 = sshll.u32 %s2007_s17, 4  ;;  %s1864_s18 = int_to_ptr.vmem [resolvable:$false] %s1863_s18 }
  0x1d   : > { %s1865_s20 = scalar_lea.vmem %s1864_s18, 128  ;;  %p1866_p3 = scmp.lt.s32.totalorder %s2102_s28, %s1864_s18 }
  0x1e   : > { %p1861_p7 = pnand %p1859_p5, %p1845_p8  ;;  %p1867_p11 = scmp.lt.s32.totalorder %s1865_s20, %s1858_s11 }
  0x20   : > { %p1862_p9 = pneg %p1861_p7  ;;  %p1868_p12 = por %p1867_p11, %p1866_p3 }
  0x22   : > { %p1869_p13 = pnand %p1868_p12, %p1862_p9 }
  0x24   : > { %1872 = shalt.err (!%p1869_p13)
}
  0x25   : > { %1686 = dma.hbm_to_vmem [thread:$0]  (!%p2098_p6), %s2096_s26, 64, %s2102_s28, %s2106_s4  }
  0x26   : > { %s2135_s21 = sadd.s32 4294967295, %s2005_s15   ;;  %s170_s22 = scalar_lea.vmem [#allocation7], %s2104_s30 }
  0x27   : > { %s177_s23 = sshll.u32 %s170_s22, 4  ;;  %s1643_s24 = sadd.s32 4294967294, %s2005_s15   ;;  %s2163_s23 = int_to_ptr.vmem [resolvable:$true] %s177_s23 }
  0x28   : > { %p40_p3 = scmp.ne.s32.totalorder %s1997_s13, %s1993_s12  ;;  %p3672_p10 = scmp.eq.s32.totalorder %s2135_s21, 0 }
  0x29   : > { %p111_p1 = scmp.eq.s32.totalorder %s2135_s21, 1  ;;  %p117_p2 = scmp.eq.s32.totalorder %s1643_s24, 1 }
  0x2a   : > { %p2145_p4 = por %p3672_p10, %p40_p3  ;;  %p1644_p5 = scmp.ge.s32.totalorder %s2005_s15, 1 }
  0x2b   : > { %p2153_p7 = por %p111_p1, %p34_p0  ;;  %p2157_p9 = por %p117_p2, %p40_p3 }
  0x2c   : > { %s3782_s25 = scalar_select %p2145_p4, 1, 0 }
  0x2d   : > { %s3783_s26 = scalar_select %p2153_p7, 1, 0 }
  0x2e   : > { %s3784_s27 = scalar_select %p2157_p9, 1, 0 }
  0x2f   : > { %p124_p11 = scmp.lt.s32.totalorder %s2005_s15, 3  ;;  %s1665_s28 = sshll.u32 %s2005_s15, 7 }
  0x30   : > { %s2008_s5 = smov [#allocation5]   ;;  %s2172_s9 = scalar_lea.hbm %s3670_s2, %s1665_s28 }
  0x31   : > { %p2165_p12 = pnand %p1644_p5, %p124_p11  ;;  %s137_s6 = sshll.u32 %s2008_s5, 4  ;;  %s2176_s6 = int_to_ptr.vmem [resolvable:$true] %s137_s6 }
  0x32   : > { %s1873_s11 = scalar_lea.hbm %s2172_s9, 384  ;;  %s1878_s20 = scalar_lea.hbm %s3670_s2, 768 }
  0x33   : > { %s3785_s30 = scalar_select %p2165_p12, 1, 0 }
  0x34   : > { %p1679_p0 = pneg %p2165_p12  ;;  %p1874_p3 = scmp.ne.s32.totalorder %s2172_s9, %s1873_s11 }
  0x35   : > { %p1879_p5 = scmp.lt.u32.totalorder %s2172_s9, %s3670_s2  ;;  %p1880_p11 = scmp.lt.u32.totalorder %s1878_s20, %s1873_s11 }
  0x36   : > { %p2180_p13 = pnand %p1679_p0, %p3672_p10  ;;  %p1876_p1 = pnand %p1874_p3, %p1845_p8 }
  0x37   : > { %p1881_p9 = por %p1880_p11, %p1879_p5  ;;  %p1882_p0 = scmp.lt.u32.totalorder %s1873_s11, %s2172_s9 }
  0x38   : > { %p1877_p2 = pneg %p1876_p1 }
  0x39   : > { %p1883_p10 = por %p1882_p0, %p1881_p9 }
  0x3b   : > { %p1884_p7 = pnand %p1883_p10, %p1877_p2 }
  0x3d   : > { %1887 = shalt.err (!%p1884_p7)
}
  0x3e   : > { %s1888_s28 = scalar_lea.vmem %s2163_s23, 384  ;;  %s2009_s5 = smov [#allocation7]  }
  0x3f   : > { %p1889_p3 = scmp.ne.s32.totalorder %s2163_s23, %s1888_s28  ;;  %s1893_s7 = sshll.u32 %s2009_s5, 4  ;;  %s1894_s7 = int_to_ptr.vmem [resolvable:$false] %s1893_s7 }
  0x40   : > { %s1895_s8 = scalar_lea.vmem %s1894_s7, 768  ;;  %p1896_p12 = scmp.lt.s32.totalorder %s2163_s23, %s1894_s7 }
  0x41   : > { %p1891_p1 = pnand %p1889_p3, %p1845_p8  ;;  %p1897_p5 = scmp.lt.s32.totalorder %s1895_s8, %s1888_s28 }
  0x43   : > { %p1892_p4 = pneg %p1891_p1  ;;  %p1898_p11 = por %p1897_p5, %p1896_p12 }
  0x45   : > { %p1899_p9 = pnand %p1898_p11, %p1892_p4 }
  0x47   : > { %1902 = shalt.err (!%p1899_p9)
}
  0x48   : > { %s2010_s11 = smov 256   ;;  %s2011_s17 = smov 128  }
  0x49   : > { %s2012_s18 = smov 8   ;;  %s1903_s24 = scalar_lea.hbm %s3669_s1, 256 }
  0x4a   : > { %1689 = dma.hbm_to_vmem [thread:$0]  (!%p2098_p6), %s2172_s9, 384, %s2163_s23, %s2106_s4, %s2010_s11, %s2011_s17, %s2012_s18  }
  0x4b   : > { %p1904_p8 = scmp.ne.s32.totalorder %s3669_s1, %s1903_s24  ;;  %p1905_p10 = pneg %p2180_p13 }
  0x4c   : > { %p1910_p12 = scmp.lt.u32.totalorder %s1903_s24, %s3669_s1 }
  0x4d   : > { %p1906_p4 = pnand %p1905_p10, %p1904_p8 }
  0x4f   : > { %p1907_p7 = pneg %p1906_p4 }
  0x51   : > { %p1912_p2 = pnand %p1910_p12, %p1907_p7 }
  0x53   : > { %1915 = shalt.err (!%p1912_p2)
}
  0x54   : > { %s1916_s29 = scalar_lea.vmem %s2176_s6, 256  ;;  %p1924_p1 = scmp.lt.s32.totalorder %s2176_s6, %s2176_s6 }
  0x55   : > { %p1917_p6 = scmp.ne.s32.totalorder %s2176_s6, %s1916_s29  ;;  %p1925_p5 = scmp.lt.s32.totalorder %s1916_s29, %s1916_s29 }
  0x57   : > { %p1919_p0 = pnand %p1917_p6, %p1905_p10  ;;  %p1926_p11 = por %p1925_p5, %p1924_p1 }
  0x59   : > { %p1920_p3 = pneg %p1919_p0 }
  0x5b   : > { %p1927_p9 = pnand %p1926_p11, %p1920_p3 }
  0x5d   : > { %1930 = shalt.err (!%p1927_p9)
}
  0x5e   : > { %1682 = dma.hbm_to_vmem [thread:$0]  (!%p2180_p13), %s3669_s1, 256, %s2176_s6, [#allocation6]  }
  0x5f   : > { %p3787_p8 = scmp.ne.s32.totalorder %s3785_s30, 0 }
  0x61   : > { %189 = sbr.rel (%p3787_p8) target bundleno = 642 (0x282), region = 32 }
  0x68   : > { %s191_s9 = sand.u32 1, %s2135_s21   ;;  %s2233_s11 = sand.u32 1, %s1997_s13  }
  0x69   : > { %s1652_s17 = sshll.u32 %s2233_s11, 2  ;;  %s192_s18 = scalar_lea.sflag [#allocation3], %s191_s9 }
  0x6a   : > { %s2236_s20 = scalar_lea.vmem [#allocation2], %s1652_s17  ;;  %p3788_p10 = scmp.ne.s32.totalorder %s3782_s25, 0 }
  0x6c   : > { %1976 = dma.done.wait (%p3788_p10), %s192_s18, 64  }
  0x6d   : > { %1978 = vsyncadd (%p3788_p10), %s192_s18, 4294967232  ;;  %p3789_p13 = scmp.eq.s32.totalorder %s2135_s21, 0 }
  0x6f   : > { %1980 = dma.done.wait (%p3789_p13), [#allocation6], 256   ;;  %p3790_p4 = pmov %p3789_p13 }
  0x70   : > { %s1668_s30 = smul.u32 24, %s2233_s11 }
  0x71   : > { %1982 = vsyncadd (%p3790_p4), [#allocation6], 4294967040 }
  0x72   : > { %s2249_s6 = scalar_lea.vmem [#allocation7], %s1668_s30 }
  0x73   : > { %1984 = dma.done.wait (%p3788_p10), %s192_s18, 384  }
  0x74   : > { %1986 = vsyncadd (%p3788_p10), %s192_s18, 4294966912  ;;  %v239_v0 = vlaneseq  ;;  %v2013_v1 = vmov 3   ;;  %v2014_v2 = vmov 4   ;;  %v2261_v5 = vld [vmem:[%s2249_s6] sm:$0xff]  ;;  %s2015_s10 = smov 112   ;;  %s2016_s25 = smov 16  }
  0x75   : > { %1754 = vset.pattern.permute.xlu1 %v2013_v1  ;;  %1753 = vset.pattern.permute.xlu0 %v2014_v2  ;;  %v297_v6 = vld [vmem:[#allocation5 + $0x4] ss:$8 sm:$0x3]  ;;  %v2267_v7 = vcombine.high %v2261_v5, %v2261_v5  ;;  %s2017_s22 = smov 1   ;;  %v2277_v11 = vld [vmem:[%s2249_s6 + $0x8] sm:$0xff]  ;;  %v2018_v16 = vmov 9  }
  0x76   : > { %v2255_v3 = vshrl.u32 %v239_v0, 7  ;;  %356 = vrot.lane.b32.xlu0 %v2261_v5, %s2015_s10  ;;  %349 = vrot.lane.b32.xlu1 %v2261_v5, %s2016_s25  ;;  %v2283_v12 = vcombine.high %v2277_v11, %v2277_v11  ;;  %v2288_v13 = vld [vmem:[%s2249_s6 + $0x10] sm:$0xff]  ;;  %s2019_s24 = smov 127   ;;  %v2020_v17 = vmov 5   ;;  %v2021_v18 = vmov 8   ;;  %s1666_s5 = sshll.u32 %s2135_s21, 7 }
  0x77   : > { %3792 = vst [vmem:[#allocation14_spill] sm:$0xff] %v2267_v7  ;;  %v2294_v14 = vcombine.high %v2288_v13, %v2288_v13  ;;  %v2301_v15 = vld [vmem:[%s2236_s20] sm:$0xf]  ;;  %v2330_v21 = vand.u32 127, %v239_v0  ;;  %vm1282_vm14 = vcmask 1043456   ;;  %s235_s7 = scalar_lea.vmem [#allocation8], %s1668_s30  ;;  %s3622_s4 = scalar_lea.hbm %s3671_s3, %s1666_s5 }
  0x78   : > { %3791 = vst [vmem:[#allocation13_spill] sm:$0xff] %v2255_v3  ;;  %v2258_v4 = vsub.s32 0, %v2255_v3  ;;  %v2271_v9 = vsub.s32 1, %v2255_v3  ;;  %3793 = vst [vmem:[#allocation15_spill] sm:$0xff] %v2283_v12  ;;  %s1540_s28 = sshll.u32 %s235_s7, 4  ;;  %s1527_s21 = scalar_lea.sflag [#allocation4], %s2233_s11  ;;  %s3624_s28 = int_to_ptr.vmem [resolvable:$true] %s1540_s28 }
  0x79   : > { %3794 = vst [vmem:[#allocation16_spill] sm:$0xff] %v2294_v14  ;;  %3795 = vst [vmem:[#allocation17_spill] sm:$0xff] %v2301_v15  ;;  %v267_v24 = vld [vmem:[#allocation5 + $0x2] ss:$8 sm:$0x3]  ;;  %vm315_vm0 = vcmp.lt.s32.totalorder %v2330_v21, 1 }
  0x7a   : > { %v302_v8 = vrot.slane %v297_v6, %v2258_v4  ;;  %351 = vrot.lane.b32.xlu1 %v2267_v7, %s2016_s25  ;;  %v306_v10 = vrot.slane %v297_v6, %v2271_v9  ;;  %v2332_v25 = vld [vmem:[#allocation5 + $0x3] ss:$8 sm:$0x3]  ;;  %v327_v26 = vld [vmem:[#allocation5 + $0x5] ss:$8 sm:$0x3]  ;;  %v272_v27 = vrot.slane %v267_v24, %v2258_v4  ;;  %v276_v28 = vrot.slane %v267_v24, %v2271_v9 }
  0x7b   : > { %v291_v29 = vrot.slane %v2332_v25, %v2271_v9  ;;  %v332_v30 = vrot.slane %v327_v26, %v2258_v4  ;;  %v336_v31 = vrot.slane %v327_v26, %v2271_v9  ;;  %vm353_vm1 = vcmp.lt.s32.totalorder %v2330_v21, 16  ;;  %s1931_s23 = scalar_lea.vmem %s3624_s28, 384  ;;  %p3970_p12 = scmp.ne.s32.totalorder %s3783_s26, 0 }
  0x7c   : > { %309 = vrot.lane.b32.xlu0 %v302_v8, %s2017_s22  ;;  %vm360_vm2 = vcmp.lt.s32.totalorder %v2330_v21, 112  ;;  %vm2349_vm3 = vcmp.gt.f32.partialorder %v272_v27, 0.5  ;;  %vm2353_vm4 = vcmp.gt.f32.partialorder %v276_v28, 0.5  ;;  %vm427_vm9 = vcmp.lt.s32.totalorder %v2330_v21, 127  ;;  %p1932_p7 = scmp.ne.s32.totalorder %s3624_s28, %s1931_s23  ;;  %s2029_s9 = smov [#allocation8]  }
  0x7d   : > { %vm2357_vm5 = vcmp.gt.f32.partialorder %v291_v29, 0.5  ;;  %s1935_s17 = sshll.u32 %s2029_s9, 4  ;;  %s1936_s17 = int_to_ptr.vmem [resolvable:$false] %s1935_s17 }
  0x7e   : > { %358 = vrot.lane.b32.xlu1 %v2267_v7, %s2015_s10  ;;  %p1933_p2 = pnand %p1932_p7, %p3970_p12  ;;  %s1937_s18 = scalar_lea.vmem %s1936_s17, 768 }
  0x7f   : > { %p1938_p0 = scmp.lt.s32.totalorder %s3624_s28, %s1936_s17  ;;  %p1939_p3 = scmp.lt.s32.totalorder %s1937_s18, %s1931_s23 }
  0x80   : > { %311 = vrot.lane.b32.xlu0 %v306_v10, %s2017_s22  ;;  %p1934_p6 = pneg %p1933_p2 }
  0x81   : > { %p1940_p1 = por %p1939_p3, %p1938_p0 }
  0x82   : > { %376 = vrot.lane.b32.xlu1 %v2283_v12, %s2016_s25 }
  0x83   : > { %p1941_p5 = pnand %p1940_p1, %p1934_p6 }
  0x84   : > { %374 = vrot.lane.b32.xlu0 %v2277_v11, %s2016_s25 }
  0x86   : > { %382 = vrot.lane.b32.xlu1 %v2283_v12, %s2015_s10 }
  0x88   : > { %380 = vrot.lane.b32.xlu0 %v2277_v11, %s2015_s10 }
  0x8a   : > { %399 = vrot.lane.b32.xlu1 %v2294_v14, %s2016_s25 }
  0x8c   : > { %397 = vrot.lane.b32.xlu0 %v2288_v13, %s2016_s25 }
  0x8e   : > { %405 = vrot.lane.b32.xlu1 %v2294_v14, %s2015_s10 }
  0x90   : > { %403 = vrot.lane.b32.xlu0 %v2288_v13, %s2015_s10 }
  0x92   : > { %601 = vperm.xlu1 %1754, %v2301_v15  }
  0x94   : > { %523 = vperm.xlu0 %1753, %v2301_v15  }
  0x96   : > { %709 = vrot.lane.b32.xlu1 %v2261_v5, %s2017_s22 }
  0x97   : > { %1755 = vset.pattern.permute.xlu1 %v2018_v16 }
  0x98   : > { %711 = vrot.lane.b32.xlu0 %v2267_v7, %s2017_s22 }
  0x99   : > { %1756 = vset.pattern.permute.xlu0 %v2020_v17 }
  0x9a   : > { %715 = vrot.lane.b32.xlu1 %v2261_v5, %s2019_s24 }
  0x9c   : > { %717 = vrot.lane.b32.xlu0 %v2267_v7, %s2019_s24 }
  0x9e   : > { %729 = vrot.lane.b32.xlu1 %v2277_v11, %s2017_s22 }
  0xa0   : > { %731 = vrot.lane.b32.xlu0 %v2283_v12, %s2017_s22 }
  0xa2   : > { %735 = vrot.lane.b32.xlu1 %v2277_v11, %s2019_s24 }
  0xa4   : > { %737 = vrot.lane.b32.xlu0 %v2283_v12, %s2019_s24 }
  0xa6   : > { %1203 = vperm.xlu1 %1755, %v2301_v15  }
  0xa8   : > { %749 = vrot.lane.b32.xlu0 %v2288_v13, %s2017_s22 }
  0xaa   : > { %751 = vrot.lane.b32.xlu1 %v2294_v14, %s2017_s22 }
  0xab   : > { %1757 = vset.pattern.permute.xlu1 %v2021_v18 }
  0xac   : > { %755 = vrot.lane.b32.xlu0 %v2288_v13, %s2019_s24 }
  0xae   : > { %757 = vrot.lane.b32.xlu1 %v2294_v14, %s2019_s24 }
  0xe8   : > { %v357_v19 = vpop.permute.xlu0 %356  ;;  %v350_v20 = vpop.permute.xlu1 %349 }
  0xec   : > { %v352_v22 = vpop.permute.xlu1 %351 }
  0xed   : > { %v355_v41 = vsel %vm353_vm1, %v352_v22, %v350_v20  ;;  %v354_v47 = vsel %vm353_vm1, %v350_v20, %v352_v22 }
  0xee   : > { %v310_v23 = vpop.permute.xlu0 %309 }
  0xf0   : > { %v359_v32 = vpop.permute.xlu1 %358 }
  0xf1   : > { %v361_v42 = vsel %vm360_vm2, %v357_v19, %v359_v32  ;;  %v362_v48 = vsel %vm360_vm2, %v359_v32, %v357_v19  ;;  %v287_v32 = vrot.slane %v2332_v25, %v2258_v4 }
  0xf2   : > { %v312_v33 = vpop.permute.xlu0 %311 }
  0xf3   : > { %v316_v34 = vsel %vm315_vm0, %v310_v23, %v312_v33  ;;  %v317_v35 = vsel %vm315_vm0, %v312_v33, %v310_v23  ;;  %vm2479_vm8 = vcmp.gt.f32.partialorder %v287_v32, 0.5  ;;  %v2024_v33 = vmov 1  }
  0xf4   : > { %v321_v36 = vrot.slane %v317_v35, %v2258_v4  ;;  %v325_v37 = vrot.slane %v316_v34, %v2258_v4  ;;  %v377_v45 = vpop.permute.xlu1 %376 }
  0xf6   : > { %vm2365_vm6 = vcmp.eq.f32.partialorder %v321_v36, %v332_v30  ;;  %vm2369_vm7 = vcmp.eq.f32.partialorder %v325_v37, %v336_v31  ;;  %v375_v46 = vpop.permute.xlu0 %374  ;;  %v2495_v36 = vld [vmem:[#allocation5] ss:$8 sm:$0x3]  ;;  %v2497_v37 = vld [vmem:[#allocation5 + $0x1] ss:$8 sm:$0x3] }
  0xf7   : > { %v363_v49 = vsel %vm2365_vm6, %v355_v41, %v361_v42  ;;  %v365_v50 = vsel %vm2365_vm6, %v361_v42, %v355_v41  ;;  %v364_v52 = vsel %vm2369_vm7, %v354_v47, %v362_v48  ;;  %v366_v53 = vsel %vm2369_vm7, %v362_v48, %v354_v47 }
  0xf8   : > { %v2383_v51 = vsel %vm2349_vm3, %v365_v50, %v363_v49  ;;  %v378_v54 = vsel %vm353_vm1, %v375_v46, %v377_v45  ;;  %v2395_v55 = vsel %vm2353_vm4, %v366_v53, %v364_v52  ;;  %v2399_v56 = vsel %vm2357_vm5, %v364_v52, %v366_v53  ;;  %v383_v58 = vpop.permute.xlu1 %382 }
  0xf9   : > { %3806 = vst [vmem:[#allocation18_spill] sm:$0xff] %v2383_v51  ;;  %417 = vrot.lane.b32.xlu1 %v2383_v51, %s2017_s22  ;;  %3807 = vst [vmem:[#allocation19_spill] sm:$0xff] %v2395_v55  ;;  %v379_v57 = vsel %vm353_vm1, %v377_v45, %v375_v46  ;;  %419 = vrot.lane.b32.xlu0 %v2395_v55, %s2017_s22  ;;  %v2487_v34 = vsel %vm2479_vm8, %v363_v49, %v365_v50 }
  0xfa   : > { %3808 = vst [vmem:[#allocation20_spill] sm:$0xff] %v2399_v56  ;;  %v381_v59 = vpop.permute.xlu0 %380  ;;  %3817 = vst [vmem:[#allocation27_spill] sm:$0xff] %v2487_v34  ;;  %v246_v40 = vrot.slane %v2495_v36, %v2271_v9  ;;  %v261_v41 = vrot.slane %v2497_v37, %v2271_v9 }
  0xfb   : > { %v384_v60 = vsel %vm360_vm2, %v381_v59, %v383_v58  ;;  %v385_v61 = vsel %vm360_vm2, %v383_v58, %v381_v59 }
  0xfc   : > { %v387_v62 = vsel %vm2369_vm7, %v378_v54, %v385_v61  ;;  %v386_v63 = vsel %vm2365_vm6, %v379_v57, %v384_v60  ;;  %v388_v0 = vsel %vm2365_vm6, %v384_v60, %v379_v57  ;;  %v389_v1 = vsel %vm2369_vm7, %v385_v61, %v378_v54  ;;  %v400_v2 = vpop.permute.xlu1 %399 }
  0xfd   : > { %423 = vrot.lane.b32.xlu1 %v2383_v51, %s2019_s24  ;;  %425 = vrot.lane.b32.xlu0 %v2395_v55, %s2019_s24  ;;  %v2423_v8 = vsel %vm2353_vm4, %v389_v1, %v387_v62  ;;  %v2427_v10 = vsel %vm2357_vm5, %v387_v62, %v389_v1  ;;  %v2431_v16 = vsel %vm2349_vm3, %v388_v0, %v386_v63  ;;  %vm2526_vm10 = vcmp.gt.f32.partialorder %v246_v40, 0.5 }
  0xfe   : > { %v398_v6 = vpop.permute.xlu0 %397  ;;  %3809 = vst [vmem:[#allocation21_spill] sm:$0xff] %v2423_v8  ;;  %3810 = vst [vmem:[#allocation22_spill] sm:$0xff] %v2427_v10  ;;  %v2516_v42 = vsel %vm2479_vm8, %v386_v63, %v388_v0  ;;  %vm2530_vm11 = vcmp.gt.f32.partialorder %v261_v41, 0.5 }
  0xff   : > { %3811 = vst [vmem:[#allocation23_spill] sm:$0xff] %v2431_v16  ;;  %v401_v17 = vsel %vm353_vm1, %v398_v6, %v400_v2  ;;  %v402_v18 = vsel %vm353_vm1, %v400_v2, %v398_v6  ;;  %3818 = vst [vmem:[#allocation28_spill] sm:$0xff] %v2516_v42 }
 0x100   : > { %v406_v19 = vpop.permute.xlu1 %405 }
 0x101   : > { %438 = vrot.lane.b32.xlu1 %v2431_v16, %s2017_s22  ;;  %440 = vrot.lane.b32.xlu0 %v2423_v8, %s2017_s22 }
 0x102   : > { %v404_v20 = vpop.permute.xlu0 %403 }
 0x103   : > { %v407_v22 = vsel %vm360_vm2, %v404_v20, %v406_v19  ;;  %v408_v23 = vsel %vm360_vm2, %v406_v19, %v404_v20  ;;  %v2022_v20 = vmov 0  }
 0x104   : > { %v410_v24 = vsel %vm2369_vm7, %v401_v17, %v408_v23  ;;  %v412_v26 = vsel %vm2369_vm7, %v408_v23, %v401_v17  ;;  %v409_v27 = vsel %vm2365_vm6, %v402_v18, %v407_v22  ;;  %v411_v28 = vsel %vm2365_vm6, %v407_v22, %v402_v18 }
 0x105   : > { %444 = vrot.lane.b32.xlu1 %v2431_v16, %s2019_s24  ;;  %v2457_v29 = vsel %vm2353_vm4, %v412_v26, %v410_v24  ;;  %v2461_v30 = vsel %vm2357_vm5, %v410_v24, %v412_v26  ;;  %446 = vrot.lane.b32.xlu0 %v2423_v8, %s2019_s24  ;;  %v2467_v31 = vsel %vm2349_vm3, %v411_v28, %v409_v27  ;;  %v2023_v24 = vmov 2  }
 0x106   : > { %3812 = vst [vmem:[#allocation24_spill] sm:$0xff] %v2457_v29  ;;  %3813 = vst [vmem:[#allocation25_spill] sm:$0xff] %v2461_v30  ;;  %v2564_v59 = vsel %vm2479_vm8, %v409_v27, %v411_v28 }
 0x107   : > { %3814 = vst [vmem:[#allocation26_spill] sm:$0xff] %v2467_v31  ;;  %3825 = vst [vmem:[#allocation31_spill] sm:$0xff] %v2564_v59 }
 0x109   : > { %458 = vrot.lane.b32.xlu1 %v2467_v31, %s2017_s22  ;;  %460 = vrot.lane.b32.xlu0 %v2457_v29, %s2017_s22 }
 0x10d   : > { %464 = vrot.lane.b32.xlu1 %v2467_v31, %s2019_s24  ;;  %466 = vrot.lane.b32.xlu0 %v2457_v29, %s2019_s24 }
 0x111   : > { %911 = vrot.lane.b32.xlu1 %v2399_v56, %s2017_s22  ;;  %909 = vrot.lane.b32.xlu0 %v2487_v34, %s2017_s22  ;;  %v2491_v25 = vpop.permute.xlu1 %601 }
 0x113   : > { %v2493_v35 = vpop.permute.xlu0 %523 }
 0x115   : > { %917 = vrot.lane.b32.xlu1 %v2399_v56, %s2019_s24  ;;  %915 = vrot.lane.b32.xlu0 %v2487_v34, %s2019_s24  ;;  %v2503_v38 = vpop.permute.xlu1 %709 }
 0x117   : > { %v2505_v39 = vpop.permute.xlu0 %711 }
 0x118   : > { %v713_v45 = vsel %vm315_vm0, %v2503_v38, %v2505_v39 }
 0x119   : > { %931 = vrot.lane.b32.xlu1 %v2427_v10, %s2017_s22  ;;  %929 = vrot.lane.b32.xlu0 %v2516_v42, %s2017_s22  ;;  %v2524_v46 = vpop.permute.xlu1 %715 }
 0x11b   : > { %v2534_v48 = vpop.permute.xlu0 %717 }
 0x11c   : > { %v720_v49 = vsel %vm427_vm9, %v2534_v48, %v2524_v46 }
 0x11d   : > { %v722_v50 = vsel %vm2369_vm7, %v713_v45, %v720_v49  ;;  %v724_v52 = vsel %vm2369_vm7, %v720_v49, %v713_v45  ;;  %937 = vrot.lane.b32.xlu1 %v2427_v10, %s2019_s24  ;;  %935 = vrot.lane.b32.xlu0 %v2516_v42, %s2019_s24  ;;  %v2556_v57 = vpop.permute.xlu1 %729  ;;  %v2025_v45 = vmov 7   ;;  %v2026_v49 = vmov 10  }
 0x11e   : > { %v2548_v53 = vsel %vm2526_vm10, %v724_v52, %v722_v50  ;;  %v2552_v54 = vsel %vm2530_vm11, %v722_v50, %v724_v52  ;;  %v2027_v50 = vmov 6  }
 0x11f   : > { %3823 = vst [vmem:[#allocation29_spill] sm:$0xff] %v2548_v53  ;;  %3824 = vst [vmem:[#allocation30_spill] sm:$0xff] %v2552_v54  ;;  %v2558_v58 = vpop.permute.xlu0 %731 }
 0x120   : > { %v733_v60 = vsel %vm315_vm0, %v2556_v57, %v2558_v58 }
 0x121   : > { %951 = vrot.lane.b32.xlu1 %v2461_v30, %s2017_s22  ;;  %949 = vrot.lane.b32.xlu0 %v2564_v59, %s2017_s22  ;;  %v2572_v61 = vpop.permute.xlu1 %735 }
 0x123   : > { %v2574_v62 = vpop.permute.xlu0 %737 }
 0x124   : > { %v740_v63 = vsel %vm427_vm9, %v2574_v62, %v2572_v61 }
 0x125   : > { %v742_v0 = vsel %vm2369_vm7, %v733_v60, %v740_v63  ;;  %v744_v1 = vsel %vm2369_vm7, %v740_v63, %v733_v60  ;;  %957 = vrot.lane.b32.xlu1 %v2461_v30, %s2019_s24  ;;  %955 = vrot.lane.b32.xlu0 %v2564_v59, %s2019_s24  ;;  %v2596_v17 = vpop.permute.xlu1 %1203 }
 0x126   : > { %v2588_v2 = vsel %vm2526_vm10, %v744_v1, %v742_v0  ;;  %v2592_v6 = vsel %vm2530_vm11, %v742_v0, %v744_v1  ;;  %3828 = vst [vmem:[#allocation34_spill] sm:$0xff] %v2596_v17 }
 0x127   : > { %3826 = vst [vmem:[#allocation32_spill] sm:$0xff] %v2588_v2  ;;  %3827 = vst [vmem:[#allocation33_spill] sm:$0xff] %v2592_v6  ;;  %v2598_v18 = vpop.permute.xlu0 %749 }
 0x129   : > { %1216 = vperm.xlu1 %1757, %v2301_v15   ;;  %1189 = vperm.xlu0 %1756, %v2301_v15   ;;  %v2602_v19 = vpop.permute.xlu1 %751 }
 0x12a   : > { %v753_v23 = vsel %vm315_vm0, %v2598_v18, %v2602_v19 }
 0x12b   : > { %v2604_v22 = vpop.permute.xlu0 %755 }
 0x12d   : > { %1758 = vset.pattern.permute.xlu1 %v2022_v20  ;;  %1759 = vset.pattern.permute.xlu0 %v2023_v24  ;;  %v2611_v26 = vpop.permute.xlu1 %757 }
 0x12e   : > { %498 = vperm.xlu1 %1758, %v2301_v15   ;;  %504 = vperm.xlu0 %1759, %v2301_v15   ;;  %v760_v27 = vsel %vm427_vm9, %v2611_v26, %v2604_v22  ;;  %v3865_v43 = vld [vmem:[#allocation33_spill] sm:$0xff] }
 0x12f   : > { %v762_v28 = vsel %vm2369_vm7, %v753_v23, %v760_v27  ;;  %v764_v32 = vsel %vm2369_vm7, %v760_v27, %v753_v23 }
 0x130   : > { %v2624_v40 = vsel %vm2526_vm10, %v764_v32, %v762_v28  ;;  %v2628_v41 = vsel %vm2530_vm11, %v762_v28, %v764_v32 }
 0x131   : > { %3829 = vst [vmem:[#allocation35_spill] sm:$0xff] %v2624_v40  ;;  %3830 = vst [vmem:[#allocation36_spill] sm:$0xff] %v2628_v41  ;;  %v2028_v41 = vmov 839922192   ;;  %v257_v40 = vrot.slane %v2497_v37, %v2258_v4 }
 0x132   : > { %1760 = vset.pattern.permute.xlu1 %v2024_v33  ;;  %1762 = vset.pattern.permute.xlu0 %v2025_v45  ;;  %v2687_v6 = vunpack.c.l.s4 %v2028_v41 }
 0x133   : > { %582 = vperm.xlu1 %1760, %v2301_v15   ;;  %1231 = vperm.xlu0 %1762, %v2301_v15   ;;  %vm2716_vm13 = vcmp.gt.f32.partialorder %v257_v40, 0.5 }
 0x134   : > { %3837 = vst [vmem:[#allocation43_spill] sm:$0xff] %v2687_v6 }
 0x137   : > { %1761 = vset.pattern.permute.xlu1 %v2026_v49  ;;  %1764 = vset.pattern.permute.xlu0 %v2027_v50 }
 0x138   : > { %1251 = vperm.xlu1 %1761, %v2301_v15  }
 0x13c   : > { %1763 = vset.pattern.permute.xlu1 %v2027_v50 }
 0x16b   : > { %v418_v52 = vpop.permute.xlu1 %417  ;;  %v420_v60 = vpop.permute.xlu0 %419 }
 0x16c   : > { %v421_v1 = vsel %vm315_vm0, %v418_v52, %v420_v60 }
 0x16f   : > { %v424_v63 = vpop.permute.xlu1 %423  ;;  %v426_v0 = vpop.permute.xlu0 %425 }
 0x170   : > { %v429_v20 = vsel %vm427_vm9, %v426_v0, %v424_v63 }
 0x171   : > { %v431_v23 = vsel %vm2369_vm7, %v421_v1, %v429_v20  ;;  %v433_v24 = vsel %vm2369_vm7, %v429_v20, %v421_v1 }
 0x172   : > { %v2643_v27 = vsel %vm2526_vm10, %v433_v24, %v431_v23  ;;  %v2647_v28 = vsel %vm2530_vm11, %v431_v23, %v433_v24 }
 0x173   : > { %3831 = vst [vmem:[#allocation37_spill] sm:$0xff] %v2643_v27  ;;  %3832 = vst [vmem:[#allocation38_spill] sm:$0xff] %v2647_v28  ;;  %v439_v32 = vpop.permute.xlu1 %438  ;;  %v441_v33 = vpop.permute.xlu0 %440 }
 0x174   : > { %v442_v50 = vsel %vm315_vm0, %v439_v32, %v441_v33 }
 0x177   : > { %v445_v45 = vpop.permute.xlu1 %444  ;;  %v447_v49 = vpop.permute.xlu0 %446 }
 0x178   : > { %v449_v14 = vsel %vm427_vm9, %v447_v49, %v445_v45 }
 0x179   : > { %v451_v1 = vsel %vm2369_vm7, %v442_v50, %v449_v14  ;;  %v453_v20 = vsel %vm2369_vm7, %v449_v14, %v442_v50 }
 0x17a   : > { %v2659_v23 = vsel %vm2526_vm10, %v453_v20, %v451_v1  ;;  %v2663_v24 = vsel %vm2530_vm11, %v451_v1, %v453_v20  ;;  %v242_v1 = vrot.slane %v2495_v36, %v2258_v4 }
 0x17b   : > { %v459_v7 = vpop.permute.xlu1 %458  ;;  %3833 = vst [vmem:[#allocation39_spill] sm:$0xff] %v2659_v23  ;;  %3834 = vst [vmem:[#allocation40_spill] sm:$0xff] %v2663_v24  ;;  %v461_v12 = vpop.permute.xlu0 %460 }
 0x17c   : > { %v462_v59 = vsel %vm315_vm0, %v459_v7, %v461_v12  ;;  %vm2697_vm12 = vcmp.gt.f32.partialorder %v242_v1, 0.5 }
 0x17f   : > { %v465_v15 = vpop.permute.xlu1 %464  ;;  %v467_v17 = vpop.permute.xlu0 %466 }
 0x180   : > { %v469_v30 = vsel %vm427_vm9, %v467_v17, %v465_v15  ;;  %v468_v41 = vsel %vm427_vm9, %v465_v15, %v467_v17 }
 0x181   : > { %v471_v14 = vsel %vm2369_vm7, %v462_v59, %v469_v30  ;;  %v473_v42 = vsel %vm2369_vm7, %v469_v30, %v462_v59  ;;  %v428_v30 = vsel %vm427_vm9, %v424_v63, %v426_v0  ;;  %v714_v63 = vsel %vm315_vm0, %v2505_v39, %v2503_v38 }
 0x182   : > { %v2681_v20 = vsel %vm2526_vm10, %v473_v42, %v471_v14  ;;  %v2685_v3 = vsel %vm2530_vm11, %v471_v14, %v473_v42  ;;  %v422_v42 = vsel %vm315_vm0, %v420_v60, %v418_v52  ;;  %v2706_v14 = vmul.f32 %v2491_v25, %v2383_v51 }
 0x183   : > { %v2671_v50 = vpop.permute.xlu1 %911  ;;  %v2675_v10 = vpop.permute.xlu0 %909  ;;  %3835 = vst [vmem:[#allocation41_spill] sm:$0xff] %v2681_v20  ;;  %3836 = vst [vmem:[#allocation42_spill] sm:$0xff] %v2685_v3  ;;  %v430_v4 = vsel %vm2365_vm6, %v422_v42, %v428_v30  ;;  %v432_v37 = vsel %vm2365_vm6, %v428_v30, %v422_v42  ;;  %v719_v52 = vsel %vm427_vm9, %v2524_v46, %v2534_v48 }
 0x184   : > { %v2726_v60 = vmul.f32 %v2491_v25, %v2395_v55  ;;  %v2736_v38 = vmul.f32 %v2491_v25, %v2431_v16  ;;  %v2740_v39 = vmul.f32 %v2491_v25, %v2423_v8  ;;  %v448_v46 = vsel %vm427_vm9, %v445_v45, %v447_v49 }
 0x185   : > { %v913_v48 = vsel %vm315_vm0, %v2675_v10, %v2671_v50  ;;  %v2752_v42 = vsel %vm2697_vm12, %v432_v37, %v430_v4  ;;  %v721_v49 = vsel %vm2365_vm6, %v714_v63, %v719_v52  ;;  %v723_v51 = vsel %vm2365_vm6, %v719_v52, %v714_v63 }
 0x186   : > { %3842 = vst [vmem:[#allocation44_spill] sm:$0xff] %v2752_v42  ;;  %v443_v8 = vsel %vm315_vm0, %v441_v33, %v439_v32  ;;  %v526_v33 = vmul.f32 %v2493_v35, %v2752_v42  ;;  %v527_v52 = vmul.f32 %v2493_v35, %v2643_v27 }
 0x187   : > { %v2693_v59 = vpop.permute.xlu1 %917  ;;  %v2695_v36 = vpop.permute.xlu0 %915  ;;  %v2772_v15 = vsel %vm2365_vm6, %v443_v8, %v448_v46  ;;  %v2776_v17 = vsel %vm2365_vm6, %v448_v46, %v443_v8  ;;  %v2810_v46 = vmul.f32 %v2491_v25, %v2487_v34  ;;  %v734_v34 = vsel %vm315_vm0, %v2558_v58, %v2556_v57 }
 0x188   : > { %v920_v1 = vsel %vm427_vm9, %v2693_v59, %v2695_v36  ;;  %v2828_v42 = vsel %vm2697_vm12, %v2776_v17, %v2772_v15  ;;  %v739_v57 = vsel %vm427_vm9, %v2572_v61, %v2574_v62  ;;  %v530_v58 = vcombine.low %v526_v33, %v527_v52 }
 0x189   : > { %v922_v55 = vsel %vm2369_vm7, %v913_v48, %v920_v1  ;;  %v924_v45 = vsel %vm2369_vm7, %v920_v1, %v913_v48  ;;  %v463_v1 = vsel %vm315_vm0, %v461_v12, %v459_v7  ;;  %v2802_v12 = vmul.f32 %v2491_v25, %v2467_v31  ;;  %3845 = vst [vmem:[#allocation47_spill] sm:$0xff] %v2810_v46 }
 0x18a   : > { %v2768_v16 = vsel %vm2526_vm10, %v924_v45, %v922_v55  ;;  %v2782_v63 = vsel %vm2530_vm11, %v922_v55, %v924_v45  ;;  %v2792_v48 = vsel %vm2365_vm6, %v463_v1, %v468_v41  ;;  %v2796_v8 = vsel %vm2365_vm6, %v468_v41, %v463_v1  ;;  %3848 = vst [vmem:[#allocation50_spill] sm:$0xff] %v2828_v42 }
 0x18b   : > { %v2732_v30 = vpop.permute.xlu1 %931  ;;  %v2748_v40 = vpop.permute.xlu0 %929  ;;  %3843 = vst [vmem:[#allocation45_spill] sm:$0xff] %v2768_v16  ;;  %3844 = vst [vmem:[#allocation46_spill] sm:$0xff] %v2782_v63  ;;  %v2806_v55 = vmul.f32 %v2491_v25, %v2457_v29  ;;  %v2814_v45 = vmul.f32 %v2491_v25, %v2399_v56  ;;  %v2818_v41 = vsel %vm2697_vm12, %v723_v51, %v721_v49 }
 0x18c   : > { %3847 = vst [vmem:[#allocation49_spill] sm:$0xff] %v2818_v41  ;;  %v608_v1 = vcombine.low %v2706_v14, %v2726_v60  ;;  %v2838_v56 = vsel %vm2697_vm12, %v2796_v8, %v2792_v48  ;;  %v933_v14 = vsel %vm315_vm0, %v2748_v40, %v2732_v30  ;;  %v541_v63 = vmul.f32 %v2493_v35, %v2659_v23 }
 0x18d   : > { %3846 = vst [vmem:[#allocation48_spill] sm:$0xff] %v2814_v45  ;;  %3849 = vst [vmem:[#allocation51_spill] sm:$0xff] %v2838_v56  ;;  %v540_v45 = vmul.f32 %v2493_v35, %v2828_v42  ;;  %v2874_v62 = vsel %vm2716_vm13, %v721_v49, %v723_v51  ;;  %v2878_v33 = vsel %vm2716_vm13, %v430_v4, %v432_v37 }
 0x18e   : > { %3852 = vst [vmem:[#allocation54_spill] sm:$0xff] %v2874_v62  ;;  %3853 = vst [vmem:[#allocation55_spill] sm:$0xff] %v2878_v33  ;;  %v554_v52 = vmul.f32 %v2493_v35, %v2838_v56  ;;  %v741_v51 = vsel %vm2365_vm6, %v734_v34, %v739_v57  ;;  %v743_v37 = vsel %vm2365_vm6, %v739_v57, %v734_v34 }
 0x18f   : > { %v2784_v32 = vpop.permute.xlu1 %937  ;;  %v2798_v7 = vpop.permute.xlu0 %935  ;;  %v754_v49 = vsel %vm315_vm0, %v2602_v19, %v2598_v18  ;;  %v532_v56 = vadd.f32 %v530_v58, %v2261_v5  ;;  %v674_v34 = vmul.f32 %v2493_v35, %v2878_v33  ;;  %v544_v57 = vcombine.low %v540_v45, %v541_v63 }
 0x190   : > { %v940_v60 = vsel %vm427_vm9, %v2784_v32, %v2798_v7  ;;  %v919_v19 = vsel %vm427_vm9, %v2695_v36, %v2693_v59  ;;  %v875_v58 = vmul.f32 %v2552_v54, %v2491_v25  ;;  %v2925_v63 = vsel %vm2697_vm12, %v743_v37, %v741_v51 }
 0x191   : > { %v942_v29 = vsel %vm2369_vm7, %v933_v14, %v940_v60  ;;  %v944_v31 = vsel %vm2369_vm7, %v940_v60, %v933_v14  ;;  %v555_v14 = vmul.f32 %v2493_v35, %v2681_v20  ;;  %v804_v60 = vmul.f32 %v2818_v41, %v2491_v25  ;;  %3854 = vst [vmem:[#allocation56_spill] sm:$0xff] %v2925_v63 }
 0x192   : > { %v2866_v6 = vsel %vm2526_vm10, %v944_v31, %v942_v29  ;;  %v2870_v61 = vsel %vm2530_vm11, %v942_v29, %v944_v31  ;;  %v805_v29 = vmul.f32 %v2548_v53, %v2491_v25  ;;  %v636_v31 = vcombine.low %v2802_v12, %v2806_v55 }
 0x193   : > { %v2848_v27 = vpop.permute.xlu1 %951  ;;  %v2858_v46 = vpop.permute.xlu0 %949  ;;  %3850 = vst [vmem:[#allocation52_spill] sm:$0xff] %v2866_v6  ;;  %3851 = vst [vmem:[#allocation53_spill] sm:$0xff] %v2870_v61  ;;  %v759_v20 = vsel %vm427_vm9, %v2604_v22, %v2611_v26  ;;  %v2905_v12 = vmul.f32 %v2874_v62, %v2491_v25  ;;  %v675_v55 = vmul.f32 %v2493_v35, %v2647_v28 }
 0x194   : > { %v558_v18 = vcombine.low %v554_v52, %v555_v14  ;;  %v953_v22 = vsel %vm315_vm0, %v2858_v46, %v2848_v27  ;;  %v761_v45 = vsel %vm2365_vm6, %v754_v49, %v759_v20  ;;  %v763_v36 = vsel %vm2365_vm6, %v759_v20, %v754_v49 }
 0x195   : > { %v610_v52 = vadd.f32 %v608_v1, %v532_v56  ;;  %v914_v14 = vsel %vm315_vm0, %v2671_v50, %v2675_v10  ;;  %v678_v20 = vcombine.low %v674_v34, %v675_v55  ;;  %v2955_v44 = vsel %vm2716_vm13, %v2772_v15, %v2776_v17 }
 0x196   : > { %v921_v33 = vsel %vm2365_vm6, %v914_v14, %v919_v19  ;;  %v923_v42 = vsel %vm2365_vm6, %v919_v19, %v914_v14  ;;  %3856 = vst [vmem:[#allocation58_spill] sm:$0xff] %v2955_v44  ;;  %v546_v10 = vadd.f32 %v2277_v11, %v544_v57  ;;  %v560_v50 = vadd.f32 %v2288_v13, %v558_v18 }
 0x197   : > { %v958_v4 = vpop.permute.xlu1 %957  ;;  %v956_v23 = vpop.permute.xlu0 %955  ;;  %v808_v1 = vcombine.low %v804_v60, %v805_v29  ;;  %v2961_v9 = vsel %vm2716_vm13, %v741_v51, %v743_v37  ;;  %v818_v47 = vmul.f32 %v2925_v63, %v2491_v25  ;;  %v819_v15 = vmul.f32 %v2588_v2, %v2491_v25  ;;  %v3861_v37 = vld [vmem:[#allocation40_spill] sm:$0xff] }
 0x198   : > { %v960_v26 = vsel %vm427_vm9, %v958_v4, %v956_v23  ;;  %3857 = vst [vmem:[#allocation59_spill] sm:$0xff] %v2961_v9  ;;  %v2975_v17 = vsel %vm2697_vm12, %v763_v36, %v761_v45  ;;  %v680_v60 = vadd.f32 %v678_v20, %v610_v52  ;;  %v2979_v29 = vsel %vm2697_vm12, %v923_v42, %v921_v33 }
 0x199   : > { %v962_v59 = vsel %vm2369_vm7, %v953_v22, %v960_v26  ;;  %v964_v28 = vsel %vm2369_vm7, %v960_v26, %v953_v22  ;;  %3859 = vst [vmem:[#allocation61_spill] sm:$0xff] %v2975_v17  ;;  %3860 = vst [vmem:[#allocation62_spill] sm:$0xff] %v2979_v29  ;;  %v688_v51 = vmul.f32 %v2493_v35, %v2955_v44 }
 0x19a   : > { %v2945_v54 = vsel %vm2526_vm10, %v964_v28, %v962_v59  ;;  %v2949_v56 = vsel %vm2530_vm11, %v962_v59, %v964_v28  ;;  %v2969_v28 = vsel %vm2716_vm13, %v2792_v48, %v2796_v8  ;;  %v689_v49 = vmul.f32 %v2493_v35, %v3861_v37 }
 0x19b   : > { %3855 = vst [vmem:[#allocation57_spill] sm:$0xff] %v2945_v54  ;;  %3858 = vst [vmem:[#allocation60_spill] sm:$0xff] %v2969_v28  ;;  %v939_v48 = vsel %vm427_vm9, %v2798_v7, %v2784_v32  ;;  %v959_v8 = vsel %vm427_vm9, %v956_v23, %v958_v4  ;;  %v3862_v34 = vcombine.low %v2736_v38, %v2740_v39 }
 0x19c   : > { %v638_v57 = vadd.f32 %v636_v31, %v560_v50  ;;  %v702_v18 = vmul.f32 %v2493_v35, %v2969_v28  ;;  %v703_v19 = vmul.f32 %v2493_v35, %v2685_v3  ;;  %v1004_v22 = vmul.f32 %v2979_v29, %v2493_v35 }
 0x19d   : > { %v624_v55 = vadd.f32 %v3862_v34, %v546_v10  ;;  %v1005_v32 = vmul.f32 %v2768_v16, %v2493_v35  ;;  %v934_v23 = vsel %vm315_vm0, %v2732_v30, %v2748_v40  ;;  %v954_v38 = vsel %vm315_vm0, %v2848_v27, %v2858_v46  ;;  %v3864_v27 = vld [vmem:[#allocation35_spill] sm:$0xff]  ;;  %v3878_v16 = vld [vmem:[#allocation25_spill] sm:$0xff] }
 0x19e   : > { %v941_v39 = vsel %vm2365_vm6, %v934_v23, %v939_v48  ;;  %v943_v7 = vsel %vm2365_vm6, %v939_v48, %v934_v23  ;;  %v961_v31 = vsel %vm2365_vm6, %v954_v38, %v959_v8  ;;  %v963_v4 = vsel %vm2365_vm6, %v959_v8, %v954_v38  ;;  %v3874_v38 = vld [vmem:[#allocation28_spill] sm:$0xff] }
 0x19f   : > { %v3020_v30 = vsel %vm2716_vm13, %v761_v45, %v763_v36  ;;  %v832_v21 = vmul.f32 %v2975_v17, %v2491_v25  ;;  %v833_v40 = vmul.f32 %v3864_v27, %v2491_v25  ;;  %v810_v46 = vadd.f32 %v808_v1, %v680_v60 }
 0x1a0   : > { %3863 = vst [vmem:[#allocation63_spill] sm:$0xff] %v3020_v30  ;;  %v878_v26 = vcombine.low %v2905_v12, %v875_v58  ;;  %v888_v59 = vmul.f32 %v2961_v9, %v2491_v25  ;;  %v692_v52 = vcombine.low %v688_v51, %v689_v49  ;;  %v706_v14 = vcombine.low %v702_v18, %v703_v19  ;;  %v3868_v51 = vld [vmem:[#allocation36_spill] sm:$0xff] }
 0x1a1   : > { %v889_v20 = vmul.f32 %v3865_v43, %v2491_v25  ;;  %v1008_v10 = vcombine.low %v1004_v22, %v1005_v32  ;;  %v3033_v45 = vsel %vm2697_vm12, %v943_v7, %v941_v39  ;;  %v3037_v36 = vsel %vm2697_vm12, %v963_v4, %v961_v31 }
 0x1a2   : > { %3866 = vst [vmem:[#allocation64_spill] sm:$0xff] %v3033_v45  ;;  %3867 = vst [vmem:[#allocation65_spill] sm:$0xff] %v3037_v36  ;;  %v822_v50 = vcombine.low %v818_v47, %v819_v15  ;;  %v902_v12 = vmul.f32 %v3020_v30, %v2491_v25  ;;  %v694_v58 = vadd.f32 %v692_v52, %v624_v55  ;;  %v3870_v55 = vld [vmem:[#allocation13_spill] sm:$0xff]  ;;  %v3876_v52 = vld [vmem:[#allocation48_spill] sm:$0xff] }
 0x1a3   : > { %v708_v1 = vadd.f32 %v706_v14, %v638_v57  ;;  %v836_v60 = vcombine.low %v832_v21, %v833_v40  ;;  %v903_v49 = vmul.f32 %v3868_v51, %v2491_v25  ;;  %v3045_v48 = vsel %vm2716_vm13, %v921_v33, %v923_v42  ;;  %v3871_v57 = vld [vmem:[#allocation43_spill] sm:$0xff]  ;;  %v3873_v33 = vld [vmem:[#allocation22_spill] sm:$0xff] }
 0x1a4   : > { %3869 = vst [vmem:[#allocation66_spill] sm:$0xff] %v3045_v48  ;;  %v880_v8 = vadd.f32 %v878_v26, %v810_v46  ;;  %v1018_v24 = vmul.f32 %v3033_v45, %v2493_v35  ;;  %v1019_v47 = vmul.f32 %v2866_v6, %v2493_v35  ;;  %v1032_v15 = vmul.f32 %v3037_v36, %v2493_v35  ;;  %v3875_v46 = vld [vmem:[#allocation46_spill] sm:$0xff]  ;;  %v3877_v14 = vld [vmem:[#allocation47_spill] sm:$0xff] }
 0x1a5   : > { %v1033_v34 = vmul.f32 %v2945_v54, %v2493_v35  ;;  %v3872_v18 = vunpack.c.0.s8 %v3871_v57  ;;  %v1089_v22 = vmul.f32 %v2491_v25, %v3873_v33  ;;  %v824_v32 = vadd.f32 %v822_v50, %v694_v58  ;;  %v3879_v58 = vld [vmem:[#allocation31_spill] sm:$0xff] }
 0x1a6   : > { %v1010_v42 = vadd.f32 %v1008_v10, %v880_v8  ;;  %v838_v23 = vadd.f32 %v836_v60, %v708_v1  ;;  %v1088_v21 = vmul.f32 %v2491_v25, %v3874_v38  ;;  %v1144_v40 = vmul.f32 %v3045_v48, %v2493_v35  ;;  %v3880_v60 = vld [vmem:[#allocation34_spill] sm:$0xff] }
 0x1a7   : > { %v3058_v19 = vsub.s32 %v3872_v18, %v3870_v55  ;;  %v1145_v26 = vmul.f32 %v3875_v46, %v2493_v35  ;;  %v1078_v57 = vcombine.low %v3877_v14, %v3876_v52  ;;  %v892_v55 = vcombine.low %v888_v59, %v889_v20 }
 0x1a8   : > { %v906_v18 = vcombine.low %v902_v12, %v903_v49  ;;  %v1022_v10 = vcombine.low %v1018_v24, %v1019_v47  ;;  %v1036_v8 = vcombine.low %v1032_v15, %v1033_v34  ;;  %v1190_v54 = vpop.permute.xlu0 %1189  ;;  %v1103_v50 = vmul.f32 %v2491_v25, %v3878_v16 }
 0x1a9   : > { %v1102_v1 = vmul.f32 %v2491_v25, %v3879_v58  ;;  %v1211_v48 = vrot.slane %v3880_v60, %v3058_v19  ;;  %v1080_v36 = vadd.f32 %v1078_v57, %v1010_v42  ;;  %v894_v29 = vadd.f32 %v892_v55, %v824_v32 }
 0x1aa   : > { %v908_v46 = vadd.f32 %v906_v18, %v838_v23  ;;  %v3078_v52 = vsel %vm2716_vm13, %v941_v39, %v943_v7  ;;  %v3082_v59 = vsel %vm2716_vm13, %v961_v31, %v963_v4  ;;  %v1148_v20 = vcombine.low %v1144_v40, %v1145_v26  ;;  %v1217_v18 = vpop.permute.xlu1 %1216 }
 0x1ab   : > { %3881 = vst [vmem:[#allocation13_spill] sm:$0xff] %v3078_v52  ;;  %3882 = vst [vmem:[#allocation43_spill] sm:$0xff] %v3082_v59  ;;  %v1197_v12 = vrot.slane %v1190_v54, %v3058_v19  ;;  %v1024_v49 = vadd.f32 %v1022_v10, %v894_v29  ;;  %v1213_v25 = vadd.f32 %v1211_v48, %v2261_v5 }
 0x1ac   : > { %v1038_v24 = vadd.f32 %v1036_v8, %v908_v46  ;;  %v1092_v47 = vcombine.low %v1088_v21, %v1089_v22  ;;  %v1106_v15 = vcombine.low %v1102_v1, %v1103_v50  ;;  %v1150_v34 = vadd.f32 %v1148_v20, %v1080_v36 }
 0x1ad   : > { %v1158_v42 = vmul.f32 %v3078_v52, %v2493_v35  ;;  %v1159_v39 = vmul.f32 %v2870_v61, %v2493_v35  ;;  %v1172_v0 = vmul.f32 %v3082_v59, %v2493_v35  ;;  %v1173_v7 = vmul.f32 %v2949_v56, %v2493_v35 }
 0x1ae   : > { %v1199_v54 = vmul.f32 %v1197_v12, %v1150_v34  ;;  %v1094_v29 = vadd.f32 %v1092_v47, %v1024_v49  ;;  %v1108_v31 = vadd.f32 %v1106_v15, %v1038_v24  ;;  %v1214_v4 = vmax.f32 %v1213_v25, 1e-05 }
 0x1af   : > { %v1323_v22 = vadd.f32 %v2277_v11, %v1211_v48  ;;  %v1162_v32 = vcombine.low %v1158_v42, %v1159_v39  ;;  %v1176_v36 = vcombine.low %v1172_v0, %v1173_v7  ;;  %v1402_v23 = vadd.f32 %v2288_v13, %v1211_v48 }
 0x1b0   : > { %v3097_v21 = vsub.f32 %v2261_v5, %v1199_v54  ;;  %1768 = vrcp.f32 %v1214_v4  ;;  %v1224_v10 = vrot.slane %v1217_v18, %v3058_v19 }
 0x1b1   : > { %v1164_v40 = vadd.f32 %v1162_v32, %v1094_v29  ;;  %v1178_v46 = vadd.f32 %v1176_v36, %v1108_v31  ;;  %v1324_v26 = vmax.f32 %v1323_v22, 1e-05  ;;  %v1403_v35 = vmax.f32 %v1402_v23, 1e-05 }
 0x1b2   : > { %3883 = vst [vmem:[#allocation48_spill] sm:$0xff] %v3097_v21  ;;  %v3100_v55 = vand.u32 2147483647, %v3097_v21 }
 0x1b3   : > { %v1320_v14 = vmul.f32 %v1197_v12, %v1164_v40  ;;  %v1399_v57 = vmul.f32 %v1197_v12, %v1178_v46  ;;  %1770 = vrcp.f32 %v1324_v26 }
 0x1b4   : > { %1772 = vrcp.f32 %v1403_v35  ;;  %v1290_v50 = vcombine.high %v3100_v55, %v3100_v55  ;;  %v1226_v1 = vmul.f32 %v1224_v10, %v3100_v55  ;;  %v1292_v60 = vsel %vm1282_vm14, %v3100_v55, 0.0 }
 0x1b5   : > { %v3104_v8 = vsub.f32 %v2277_v11, %v1320_v14  ;;  %v3107_v48 = vsub.f32 %v2288_v13, %v1399_v57 }
 0x1b6   : > { %v1293_v20 = vsel %vm1282_vm14, %v1290_v50, 0.0 }
 0x1b7   : > { %3884 = vst [vmem:[#allocation47_spill] sm:$0xff] %v3104_v8  ;;  %3885 = vst [vmem:[#allocation34_spill] sm:$0xff] %v3107_v48  ;;  %v3116_v12 = vand.u32 2147483647, %v3104_v8  ;;  %v3119_v49 = vand.u32 2147483647, %v3107_v48  ;;  %v1294_v24 = vadd.f32 %v1293_v20, %v1292_v60 }
 0x1b9   : > { %1295 = vadd.xlane.f32.xlu0 %v1294_v24  ;;  %v1325_v15 = vmul.f32 %v3116_v12, %v1224_v10  ;;  %v1404_v34 = vmul.f32 %v3119_v49, %v1224_v10  ;;  %v1373_v29 = vcombine.high %v3116_v12, %v3116_v12  ;;  %v1375_v32 = vsel %vm1282_vm14, %v3116_v12, 0.0 }
 0x1ba   : > { %v1769_v25 = vpop.eup %1768  ;;  %v1452_v26 = vcombine.high %v3119_v49, %v3119_v49  ;;  %v1454_v57 = vsel %vm1282_vm14, %v3119_v49, 0.0 }
 0x1bb   : > { %v1228_v47 = vmul.f32 %v1769_v25, %v1226_v1  ;;  %v1376_v36 = vsel %vm1282_vm14, %v1373_v29, 0.0  ;;  %v3890_v29 = vld [vmem:[#allocation18_spill] sm:$0xff] }
 0x1bc   : > { %v1377_v23 = vadd.f32 %v1376_v36, %v1375_v32  ;;  %v1455_v35 = vsel %vm1282_vm14, %v1452_v26, 0.0  ;;  %v3891_v32 = vld [vmem:[#allocation26_spill] sm:$0xff]  ;;  %v3894_v26 = vld [vmem:[#allocation16_spill] sm:$0xff] }
 0x1bd   : > { %v1771_v42 = vpop.eup %1770  ;;  %v3123_v0 = vmin.f32 %v1228_v47, 10.0  ;;  %v1456_v50 = vadd.f32 %v1455_v35, %v1454_v57  ;;  %v571_v36 = vsub.f32 %v3891_v32, %v2288_v13 }
 0x1be   : > { %v1773_v39 = vpop.eup %1772  ;;  %v1327_v7 = vmul.f32 %v1771_v42, %v1325_v15  ;;  %1378 = vadd.xlane.f32.xlu0 %v1377_v23  ;;  %v3886_v15 = vld [vmem:[#allocation17_spill] sm:$0xff]  ;;  %v3892_v23 = vld [vmem:[#allocation14_spill] sm:$0xff] }
 0x1bf   : > { %v1406_v54 = vmul.f32 %v1773_v39, %v1404_v34  ;;  %v1280_v31 = vcombine.high %v3123_v0, %v3123_v0  ;;  %v1283_v40 = vsel %vm1282_vm14, %v3123_v0, 0.0  ;;  %v3887_v34 = vld [vmem:[#allocation23_spill] sm:$0xff] }
 0x1c0   : > { %v3129_v4 = vmin.f32 %v1327_v7, 10.0  ;;  %v565_v42 = vsub.f32 %v3887_v34, %v2277_v11  ;;  %v3888_v39 = vld [vmem:[#allocation15_spill] sm:$0xff]  ;;  %v3889_v7 = vld [vmem:[#allocation21_spill] sm:$0xff]  ;;  %v650_v34 = vsub.f32 %v2685_v3, %v3894_v26  ;;  %v3280_v3 = vpop.permute.xlu1 %498 }
 0x1c1   : > { %v3131_v22 = vmin.f32 %v1406_v54, 10.0  ;;  %v1284_v46 = vsel %vm1282_vm14, %v1280_v31, 0.0  ;;  %v566_v54 = vsub.f32 %v3889_v7, %v3888_v39  ;;  %v561_v31 = vsub.f32 %v3890_v29, %v2261_v5 }
 0x1c2   : > { %v1285_v14 = vadd.f32 %v1284_v46, %v1283_v40  ;;  %v1364_v18 = vcombine.high %v3129_v4, %v3129_v4  ;;  %v1366_v1 = vsel %vm1282_vm14, %v3129_v4, 0.0  ;;  %1457 = vadd.xlane.f32.xlu0 %v1456_v50  ;;  %v3893_v40 = vld [vmem:[#allocation19_spill] sm:$0xff]  ;;  %v567_v35 = vand.u32 2147483647, %v565_v42 }
 0x1c3   : > { %v1443_v10 = vcombine.high %v3131_v22, %v3131_v22  ;;  %v1445_v25 = vsel %vm1282_vm14, %v3131_v22, 0.0  ;;  %v562_v46 = vsub.f32 %v3893_v40, %v3892_v23  ;;  %v568_v50 = vand.u32 2147483647, %v566_v54 }
 0x1c4   : > { %1286 = vadd.xlane.f32.xlu1 %v1285_v14  ;;  %v1367_v60 = vsel %vm1282_vm14, %v1364_v18, 0.0  ;;  %v3895_v14 = vld [vmem:[#allocation24_spill] sm:$0xff]  ;;  %v1044_v18 = vsub.f32 %v3873_v33, %v3888_v39  ;;  %v1049_v42 = vsub.f32 %v3879_v58, %v2288_v13 }
 0x1c5   : > { %v1368_v20 = vadd.f32 %v1367_v60, %v1366_v1  ;;  %v1446_v24 = vsel %vm1282_vm14, %v1443_v10, 0.0  ;;  %v572_v57 = vsub.f32 %v3895_v14, %v3894_v26  ;;  %v1043_v10 = vsub.f32 %v3874_v38, %v2277_v11  ;;  %v3896_v1 = vld [vmem:[#allocation20_spill] sm:$0xff] }
 0x1c6   : > { %v1447_v47 = vadd.f32 %v1446_v24, %v1445_v25  ;;  %v1040_v60 = vsub.f32 %v3896_v1, %v3892_v23  ;;  %v563_v25 = vand.u32 2147483647, %v561_v31  ;;  %v564_v48 = vand.u32 2147483647, %v562_v46 }
 0x1c7   : > { %v574_v8 = vand.u32 2147483647, %v572_v57  ;;  %v1046_v33 = vand.u32 2147483647, %v1044_v18  ;;  %v1045_v54 = vand.u32 2147483647, %v1043_v10  ;;  %v770_v46 = vsub.f32 %v2548_v53, %v3892_v23 }
 0x1c8   : > { %1369 = vadd.xlane.f32.xlu1 %v1368_v20  ;;  %v3897_v20 = vld [vmem:[#allocation27_spill] sm:$0xff]  ;;  %v569_v21 = vadd.f32 %v567_v35, %v563_v25  ;;  %v570_v38 = vadd.f32 %v568_v50, %v564_v48  ;;  %v1042_v1 = vand.u32 2147483647, %v1040_v60  ;;  %v1051_v31 = vand.u32 2147483647, %v1049_v42  ;;  %v3193_v18 = vld [vmem:[%s2249_s6 + $0x8] sm:$0xff] }
 0x1c9   : > { %v1039_v24 = vsub.f32 %v3897_v20, %v2261_v5  ;;  %v774_v48 = vsub.f32 %v2588_v2, %v3888_v39  ;;  %3899 = vst [vmem:[#allocation18_spill] sm:$0xff] %v3193_v18  ;;  %v844_v10 = vsub.f32 %v3865_v43, %v3888_v39  ;;  %v772_v25 = vand.u32 2147483647, %v770_v46 }
 0x1ca   : > { %v576_v20 = vadd.f32 %v574_v8, %v570_v38  ;;  %v1048_v57 = vadd.f32 %v1046_v33, %v1042_v1  ;;  %v3900_v38 = vld [vmem:[#allocation30_spill] sm:$0xff] }
 0x1cb   : > { %v1041_v14 = vand.u32 2147483647, %v1039_v24  ;;  %v840_v8 = vsub.f32 %v3900_v38, %v3892_v23 }
 0x1cc   : > { %1448 = vadd.xlane.f32.xlu1 %v1447_v47  ;;  %v573_v47 = vand.u32 2147483647, %v571_v36  ;;  %v773_v36 = vsub.f32 %v2925_v63, %v2277_v11  ;;  %v843_v11 = vsub.f32 %v2961_v9, %v3193_v18  ;;  %v3207_v1 = vmul.f32 %v576_v20, %v576_v20 }
 0x1cd   : > { %v1047_v35 = vadd.f32 %v1045_v54, %v1041_v14  ;;  %v3210_v54 = vld [vmem:[%s2249_s6 + $0x10] sm:$0xff]  ;;  %v780_v20 = vsub.f32 %v3864_v27, %v3894_v26  ;;  %v643_v27 = vsub.f32 %v2955_v44, %v3193_v18 }
 0x1ce   : > { %v575_v32 = vadd.f32 %v573_v47, %v569_v21  ;;  %v775_v14 = vand.u32 2147483647, %v773_v36  ;;  %v776_v47 = vand.u32 2147483647, %v774_v48  ;;  %v845_v42 = vand.u32 2147483647, %v843_v11 }
 0x1cf   : > { %v3205_v33 = vadd.f32 %v1051_v31, %v1047_v35  ;;  %3901 = vst [vmem:[#allocation19_spill] sm:$0xff] %v3210_v54  ;;  %v779_v58 = vsub.f32 %v2975_v17, %v3210_v54  ;;  %v3218_v31 = vand.u32 2147483647, %v844_v10  ;;  %v3903_v36 = vld [vmem:[#allocation39_spill] sm:$0xff]  ;;  %v3904_v48 = vld [vmem:[#allocation44_spill] sm:$0xff]  ;;  %v3905_v35 = vld [vmem:[#allocation37_spill] sm:$0xff]  ;;  %v649_v44 = vsub.f32 %v2969_v28, %v3210_v54 }
 0x1d0   : > { %v3201_v50 = vmul.f32 %v575_v32, %v575_v32  ;;  %v3902_v32 = vld [vmem:[#allocation50_spill] sm:$0xff]  ;;  %v3906_v11 = vld [vmem:[#allocation51_spill] sm:$0xff]  ;;  %v3232_v9 = vadd.f32 %v776_v47, %v772_v25  ;;  %v3246_v53 = vand.u32 2147483647, %v780_v20  ;;  %v3909_v47 = vld [vmem:[#allocation41_spill] sm:$0xff]  ;;  %v973_v28 = vsub.f32 %v3033_v45, %v3193_v18 }
 0x1d1   : > { %v482_v43 = vsub.f32 %v3902_v32, %v3193_v18  ;;  %v3907_v10 = vld [vmem:[#allocation55_spill] sm:$0xff]  ;;  %v3242_v38 = vand.u32 2147483647, %v779_v58  ;;  %v3912_v45 = vld [vmem:[#allocation45_spill] sm:$0xff] }
 0x1d3   : > { %v484_v63 = vand.u32 2147483647, %v482_v43  ;;  %v645_v43 = vand.u32 2147483647, %v643_v27 }
 0x1dd   : > { %1299 = vperm.xlu1 %1763, %v3886_v15   ;;  %v1050_v15 = vsub.f32 %v3878_v16, %v3894_v26  ;;  %v3182_v16 = vld [vmem:[%s2249_s6] sm:$0xff] }
 0x1de   : > { %3898 = vst [vmem:[#allocation17_spill] sm:$0xff] %v3182_v16  ;;  %v769_v13 = vsub.f32 %v2818_v41, %v3182_v16  ;;  %v839_v21 = vsub.f32 %v2874_v62, %v3182_v16  ;;  %v639_v17 = vsub.f32 %v3907_v10, %v3182_v16  ;;  %v3908_v62 = vld [vmem:[#allocation38_spill] sm:$0xff]  ;;  %v489_v10 = vsub.f32 %v3909_v47, %v3894_v26 }
 0x1df   : > { %v1052_v5 = vand.u32 2147483647, %v1050_v15  ;;  %v640_v2 = vsub.f32 %v3908_v62, %v3892_v23  ;;  %v850_v41 = vsub.f32 %v3868_v51, %v3894_v26 }
 0x1e0   : > { %v771_v24 = vand.u32 2147483647, %v769_v13  ;;  %v841_v15 = vand.u32 2147483647, %v839_v21  ;;  %v483_v13 = vsub.f32 %v3903_v36, %v3888_v39  ;;  %v479_v21 = vsub.f32 %v3905_v35, %v3892_v23 }
 0x1e1   : > { %v3203_v60 = vadd.f32 %v1052_v5, %v1048_v57  ;;  %v3216_v5 = vand.u32 2147483647, %v840_v8  ;;  %v478_v57 = vsub.f32 %v3904_v48, %v3182_v16  ;;  %v488_v8 = vsub.f32 %v3906_v11, %v3210_v54 }
 0x1e2   : > { %v3224_v46 = vadd.f32 %v775_v14, %v771_v24  ;;  %v644_v14 = vsub.f32 %v3861_v37, %v3888_v39  ;;  %v3240_v24 = vadd.f32 %v845_v42, %v841_v15  ;;  %v485_v25 = vand.u32 2147483647, %v483_v13 }
 0x1e3   : > { %v849_v37 = vsub.f32 %v3020_v30, %v3210_v54  ;;  %v480_v15 = vand.u32 2147483647, %v478_v57  ;;  %v481_v42 = vand.u32 2147483647, %v479_v21  ;;  %v490_v58 = vand.u32 2147483647, %v488_v8 }
 0x1e4   : > { %v641_v62 = vand.u32 2147483647, %v639_v17  ;;  %v646_v20 = vand.u32 2147483647, %v644_v14  ;;  %v642_v7 = vand.u32 2147483647, %v640_v2  ;;  %v974_v57 = vsub.f32 %v2866_v6, %v3888_v39 }
 0x1e5   : > { %v486_v13 = vadd.f32 %v484_v63, %v480_v15  ;;  %v487_v47 = vadd.f32 %v485_v25, %v481_v42  ;;  %v491_v11 = vand.u32 2147483647, %v489_v10  ;;  %v651_v30 = vand.u32 2147483647, %v649_v44  ;;  %v3910_v8 = vld [vmem:[#allocation62_spill] sm:$0xff]  ;;  %v3911_v63 = vld [vmem:[#allocation65_spill] sm:$0xff]  ;;  %v3272_v42 = vpop.permute.xlu0 %504 }
 0x1e6   : > { %v969_v17 = vsub.f32 %v3910_v8, %v3182_v16  ;;  %v1113_v2 = vsub.f32 %v3078_v52, %v3193_v18  ;;  %v979_v27 = vsub.f32 %v3911_v63, %v3210_v54  ;;  %v647_v14 = vadd.f32 %v645_v43, %v641_v62  ;;  %v3913_v44 = vld [vmem:[#allocation57_spill] sm:$0xff]  ;;  %v3915_v18 = vld [vmem:[#allocation46_spill] sm:$0xff] }
 0x1e7   : > { %v492_v21 = vadd.f32 %v490_v58, %v486_v13  ;;  %v648_v15 = vadd.f32 %v646_v20, %v642_v7  ;;  %v970_v25 = vsub.f32 %v3912_v45, %v3892_v23  ;;  %v980_v10 = vsub.f32 %v3913_v44, %v3894_v26  ;;  %v3914_v13 = vld [vmem:[#allocation66_spill] sm:$0xff] }
 0x1e8   : > { %v652_v58 = vand.u32 2147483647, %v650_v34  ;;  %v1109_v6 = vsub.f32 %v3914_v13, %v3182_v16  ;;  %v975_v8 = vand.u32 2147483647, %v973_v28  ;;  %v1119_v52 = vsub.f32 %v3082_v59, %v3210_v54 }
 0x1e9   : > { %v493_v51 = vadd.f32 %v491_v11, %v487_v47  ;;  %v653_v63 = vadd.f32 %v651_v30, %v647_v14  ;;  %v976_v62 = vand.u32 2147483647, %v974_v57  ;;  %v1114_v7 = vsub.f32 %v2870_v61, %v3888_v39 }
 0x1ea   : > { %v494_v43 = vmul.f32 %v492_v21, %v492_v21  ;;  %v971_v20 = vand.u32 2147483647, %v969_v17  ;;  %v1115_v45 = vand.u32 2147483647, %v1113_v2  ;;  %v981_v44 = vand.u32 2147483647, %v979_v27  ;;  %v1232_v2 = vpop.permute.xlu0 %1231 }
 0x1eb   : > { %v972_v34 = vand.u32 2147483647, %v970_v25  ;;  %v1110_v13 = vsub.f32 %v3915_v18, %v3892_v23  ;;  %v982_v28 = vand.u32 2147483647, %v980_v10  ;;  %v1120_v59 = vsub.f32 %v2949_v56, %v3894_v26 }
 0x1ec   : > { %v654_v11 = vadd.f32 %v652_v58, %v648_v15  ;;  %v1111_v30 = vand.u32 2147483647, %v1109_v6  ;;  %v977_v47 = vadd.f32 %v975_v8, %v971_v20  ;;  %v1121_v57 = vand.u32 2147483647, %v1119_v52 }
 0x1ed   : > { %v851_v14 = vand.u32 2147483647, %v849_v37  ;;  %v978_v39 = vadd.f32 %v976_v62, %v972_v34  ;;  %v1116_v21 = vand.u32 2147483647, %v1114_v7  ;;  %v501_v17 = vmul.f32 %v3280_v3, %v494_v43 }
 0x1ee   : > { %v852_v27 = vand.u32 2147483647, %v850_v41  ;;  %v495_v61 = vmul.f32 %v493_v51, %v493_v51  ;;  %v1117_v25 = vadd.f32 %v1115_v45, %v1111_v30  ;;  %v983_v54 = vadd.f32 %v981_v44, %v977_v47  ;;  %v3293_v45 = vpop.permute.xlu1 %582 }
 0x1ef   : > { %v655_v16 = vmul.f32 %v653_v63, %v653_v63  ;;  %v1112_v23 = vand.u32 2147483647, %v1110_v13  ;;  %v984_v10 = vadd.f32 %v982_v28, %v978_v39  ;;  %v1122_v18 = vand.u32 2147483647, %v1120_v59 }
 0x1f0   : > { %v656_v36 = vmul.f32 %v654_v11, %v654_v11  ;;  %v1123_v26 = vadd.f32 %v1121_v57, %v1117_v25  ;;  %v502_v6 = vmul.f32 %v3280_v3, %v495_v61  ;;  %v1239_v52 = vrot.slane %v1232_v2, %v3058_v19 }
 0x1f1   : > { %v783_v37 = vadd.f32 %v3242_v38, %v3224_v46  ;;  %v1118_v8 = vadd.f32 %v1116_v21, %v1112_v23  ;;  %v657_v15 = vmul.f32 %v655_v16, %v3280_v3  ;;  %v507_v41 = vadd.f32 %v3272_v42, %v501_v17 }
 0x1f2   : > { %v3297_v51 = vmul.f32 %v3203_v60, %v3203_v60  ;;  %v784_v59 = vadd.f32 %v3246_v53, %v3232_v9  ;;  %v985_v61 = vmul.f32 %v983_v54, %v983_v54  ;;  %v658_v19 = vmul.f32 %v656_v36, %v3280_v3  ;;  %v3316_v62 = vpop.permute.xlu1 %1251 }
 0x1f3   : > { %v848_v39 = vadd.f32 %v3218_v31, %v3216_v5  ;;  %v853_v23 = vadd.f32 %v851_v14, %v3240_v24  ;;  %v986_v16 = vmul.f32 %v984_v10, %v984_v10  ;;  %v1124_v38 = vadd.f32 %v1122_v18, %v1118_v8 }
 0x1f4   : > { %v1125_v46 = vmul.f32 %v1123_v26, %v1123_v26  ;;  %v987_v63 = vmul.f32 %v985_v61, %v3280_v3  ;;  %v508_v44 = vadd.f32 %v3272_v42, %v502_v6  ;;  %v1241_v60 = vmul.f32 %v1239_v52, %v3123_v0 }
 0x1f5   : > { %v785_v58 = vmul.f32 %v783_v37, %v783_v37  ;;  %v854_v13 = vadd.f32 %v852_v27, %v848_v39  ;;  %v509_v53 = vmul.f32 1.442695, %v507_v41  ;;  %v659_v9 = vadd.f32 %v657_v15, %v3272_v42 }
 0x1f6   : > { %v3309_v54 = vmul.f32 %v784_v59, %v784_v59  ;;  %v988_v5 = vmul.f32 %v986_v16, %v3280_v3  ;;  %v1127_v31 = vmul.f32 %v1125_v46, %v3280_v3  ;;  %v660_v18 = vadd.f32 %v658_v19, %v3272_v42 }
 0x1f7   : > { %v1126_v26 = vmul.f32 %v1124_v38, %v1124_v38  ;;  %v1329_v36 = vmul.f32 %v3129_v4, %v1239_v52  ;;  %v1408_v24 = vmul.f32 %v3131_v22, %v1239_v52  ;;  %v1656_v0 = vadd.f32 -0.002, %v3100_v55 }
 0x1f8   : > { %v855_v7 = vmul.f32 %v853_v23, %v853_v23  ;;  %v511_v43 = vmul.f32 1.442695, %v508_v44  ;;  %v989_v20 = vadd.f32 %v987_v63, %v3272_v42  ;;  %v1242_v34 = vmul.f32 %v1241_v60, %v1241_v60 }
 0x1f9   : > { %v856_v28 = vmul.f32 %v854_v13, %v854_v13  ;;  %v1128_v11 = vmul.f32 %v1126_v26, %v3280_v3  ;;  %1774 = vpow2.f32 %v509_v53  ;;  %v661_v30 = vmul.f32 1.442695, %v659_v9 }
 0x1fa   : > { %v663_v47 = vmul.f32 1.442695, %v660_v18  ;;  %v990_v57 = vadd.f32 %v988_v5, %v3272_v42  ;;  %v1129_v4 = vadd.f32 %v1127_v31, %v3272_v42  ;;  %v3324_v22 = vmul.f32 %v1656_v0, %v3316_v62 }
 0x1fb   : > { %v579_v55 = vmul.f32 %v3201_v50, %v3280_v3  ;;  %v1330_v14 = vmul.f32 %v1329_v36, %v1329_v36  ;;  %v1409_v21 = vmul.f32 %v1408_v24, %v1408_v24  ;;  %v1255_v17 = vcombine.high %v1656_v0, %v1656_v0 }
 0x1fc   : > { %1776 = vpow2.f32 %v511_v43  ;;  %v991_v2 = vmul.f32 1.442695, %v989_v20  ;;  %v580_v27 = vmul.f32 %v3207_v1, %v3280_v3  ;;  %v1243_v25 = vsub.f32 0.0, %v1242_v34 }
 0x1fd   : > { %v1130_v10 = vadd.f32 %v1128_v11, %v3272_v42  ;;  %v585_v6 = vadd.f32 %v3293_v45, %v579_v55  ;;  %v3333_v52 = vmul.f32 %v1255_v17, %v3316_v62  ;;  %v1657_v37 = vadd.f32 -0.002, %v3116_v12 }
 0x1fe   : > { %1778 = vpow2.f32 %v661_v30  ;;  %v993_v50 = vmul.f32 1.442695, %v990_v57  ;;  %v586_v8 = vadd.f32 %v3293_v45, %v580_v27  ;;  %v1259_v15 = vand.u32 2147483647, %v3324_v22 }
 0x1ff   : > { %1780 = vpow2.f32 %v663_v47  ;;  %v1131_v41 = vmul.f32 1.442695, %v1129_v4  ;;  %v1331_v59 = vsub.f32 0.0, %v1330_v14  ;;  %v1410_v1 = vsub.f32 0.0, %v1409_v21 }
 0x200   : > { %1782 = vpow2.f32 %v991_v2  ;;  %v1244_v61 = vmax.f32 %v1243_v25, -88.0  ;;  %v3339_v42 = vmul.f32 %v1657_v37, %v3316_v62  ;;  %v1658_v19 = vadd.f32 -0.002, %v3119_v49 }
 0x201   : > { %v1133_v39 = vmul.f32 1.442695, %v1130_v10  ;;  %v587_v23 = vmul.f32 1.442695, %v585_v6  ;;  %v1260_v12 = vand.u32 2147483647, %v3333_v52  ;;  %v1339_v16 = vcombine.high %v1657_v37, %v1657_v37 }
 0x202   : > { %1784 = vpow2.f32 %v993_v50  ;;  %v589_v38 = vmul.f32 1.442695, %v586_v8  ;;  %v787_v46 = vmul.f32 %v785_v58, %v3280_v3  ;;  %v1261_v63 = vsub.f32 0.0, %v1259_v15 }
 0x203   : > { %v3344_v44 = vpop.eup %1774  ;;  %1786 = vpow2.f32 %v1131_v41  ;;  %v1332_v60 = vmax.f32 %v1331_v59, -88.0  ;;  %v1411_v13 = vmax.f32 %v1410_v1, -88.0  ;;  %v3347_v53 = vmul.f32 %v1339_v16, %v3316_v62 }
 0x204   : > { %v1245_v9 = vmul.f32 1.442695, %v1244_v61  ;;  %v1343_v49 = vand.u32 2147483647, %v3339_v42  ;;  %v1418_v5 = vcombine.high %v1658_v19, %v1658_v19  ;;  %v3351_v31 = vmul.f32 %v1658_v19, %v3316_v62 }
 0x205   : > { %1788 = vpow2.f32 %v587_v23  ;;  %v788_v58 = vmul.f32 %v3309_v54, %v3280_v3  ;;  %v857_v18 = vmul.f32 %v855_v7, %v3280_v3  ;;  %v1262_v26 = vsub.f32 0.0, %v1260_v12 }
 0x206   : > { %v3356_v36 = vpop.eup %1776  ;;  %1790 = vpow2.f32 %v589_v38  ;;  %v789_v24 = vadd.f32 %v787_v46, %v3293_v45  ;;  %v1263_v0 = vmul.f32 1.442695, %v1261_v63  ;;  %v3360_v43 = vmul.f32 %v1418_v5, %v3316_v62 }
 0x207   : > { %v790_v20 = vadd.f32 %v788_v58, %v3293_v45  ;;  %v858_v34 = vmul.f32 %v856_v28, %v3280_v3  ;;  %v1333_v11 = vmul.f32 1.442695, %v1332_v60  ;;  %v1344_v30 = vand.u32 2147483647, %v3347_v53 }
 0x208   : > { %v3365_v54 = vpop.eup %1778  ;;  %1792 = vpow2.f32 %v1245_v9  ;;  %v1412_v7 = vmul.f32 1.442695, %v1411_v13  ;;  %v1345_v47 = vsub.f32 0.0, %v1343_v49  ;;  %v1422_v57 = vand.u32 2147483647, %v3351_v31 }
 0x209   : > { %v3368_v4 = vpop.eup %1780  ;;  %v1055_v62 = vmul.f32 %v3205_v33, %v3205_v33  ;;  %1794 = vpow2.f32 %v1133_v39  ;;  %v859_v55 = vadd.f32 %v857_v18, %v3293_v45  ;;  %v1265_v14 = vmul.f32 1.442695, %v1262_v26 }
 0x20a   : > { %v3373_v28 = vpop.eup %1782  ;;  %v791_v21 = vmul.f32 1.442695, %v789_v24  ;;  %v860_v17 = vadd.f32 %v858_v34, %v3293_v45  ;;  %1796 = vpow2.f32 %v1263_v0  ;;  %v1423_v2 = vand.u32 2147483647, %v3360_v43 }
 0x20b   : > { %v1057_v27 = vmul.f32 %v1055_v62, %v3280_v3  ;;  %v793_v25 = vmul.f32 1.442695, %v790_v20  ;;  %1798 = vpow2.f32 %v1333_v11  ;;  %v1346_v10 = vsub.f32 0.0, %v1344_v30 }
 0x20c   : > { %v3378_v6 = vpop.eup %1784  ;;  %1800 = vpow2.f32 %v1412_v7  ;;  %v1347_v33 = vmul.f32 1.442695, %v1345_v47  ;;  %v1424_v37 = vsub.f32 0.0, %v1422_v57  ;;  %v1058_v8 = vmul.f32 %v3297_v51, %v3280_v3  ;;  %v3916_v47 = vld [vmem:[#allocation39_spill] sm:$0xff] }
 0x20d   : > { %v3380_v50 = vpop.eup %1786  ;;  %v861_v15 = vmul.f32 1.442695, %v859_v55  ;;  %v1059_v41 = vadd.f32 %v1057_v27, %v3293_v45  ;;  %1802 = vpow2.f32 %v1265_v14  ;;  %v863_v59 = vmul.f32 1.442695, %v860_v17  ;;  %v3918_v17 = vld [vmem:[#allocation41_spill] sm:$0xff] }
 0x20e   : > { %1804 = vpow2.f32 %v791_v21  ;;  %v1425_v1 = vsub.f32 0.0, %v1423_v2  ;;  %v513_v61 = vadd.f32 1.0, %v3344_v44  ;;  %v1060_v39 = vadd.f32 %v1058_v8, %v3293_v45  ;;  %v3917_v21 = vld [vmem:[#allocation51_spill] sm:$0xff]  ;;  %v3920_v8 = vld [vmem:[#allocation21_spill] sm:$0xff] }
 0x20f   : > { %v1789_v19 = vpop.eup %1788  ;;  %1806 = vpow2.f32 %v793_v25  ;;  %v1349_v23 = vmul.f32 1.442695, %v1346_v10  ;;  %v514_v12 = vadd.f32 1.0, %v3356_v36  ;;  %v1426_v38 = vmul.f32 1.442695, %v1424_v37  ;;  %v3919_v25 = vld [vmem:[#allocation23_spill] sm:$0xff] }
 0x210   : > { %v1791_v16 = vpop.eup %1790  ;;  %1808 = vpow2.f32 %v1347_v33  ;;  %v1061_v3 = vmul.f32 1.442695, %v1059_v41  ;;  %v1428_v46 = vmul.f32 1.442695, %v1425_v1  ;;  %v591_v63 = vadd.f32 %v1789_v19, %v513_v61  ;;  %v3921_v41 = vld [vmem:[#allocation26_spill] sm:$0xff] }
 0x211   : > { %1810 = vpow2.f32 %v861_v15  ;;  %v1063_v13 = vmul.f32 1.442695, %v1060_v39  ;;  %v592_v9 = vadd.f32 %v1791_v16, %v514_v12  ;;  %v515_v45 = vmul.f32 %v3344_v44, %v3904_v48 }
 0x212   : > { %v1793_v51 = vpop.eup %1792  ;;  %1812 = vpow2.f32 %v863_v59  ;;  %v516_v5 = vmul.f32 %v3356_v36, %v3905_v35  ;;  %v665_v24 = vadd.f32 %v3365_v54, %v591_v63  ;;  %v593_v34 = vmul.f32 %v1789_v19, %v3890_v29 }
 0x213   : > { %v3388_v60 = vpop.eup %1794  ;;  %1814 = vpow2.f32 %v1349_v23  ;;  %v1247_v18 = vsub.f32 1.0, %v1793_v51  ;;  %v666_v48 = vadd.f32 %v3368_v4, %v592_v9  ;;  %v594_v35 = vmul.f32 %v1791_v16, %v3893_v40  ;;  %v3923_v23 = vld [vmem:[#allocation17_spill] sm:$0xff] }
 0x214   : > { %v3390_v49 = vpop.eup %1796  ;;  %1816 = vpow2.f32 %v1426_v38  ;;  %v519_v30 = vcombine.low %v515_v45, %v516_v5  ;;  %v533_v7 = vmul.f32 %v3344_v44, %v3902_v32  ;;  %v534_v57 = vmul.f32 %v3356_v36, %v3916_v47 }
 0x215   : > { %v3396_v58 = vpop.eup %1798  ;;  %1818 = vpow2.f32 %v1061_v3  ;;  %v1267_v20 = vadd.f32 1.0, %v3390_v49  ;;  %v3413_v55 = vmul.f32 %v1247_v18, %v1247_v18  ;;  %v547_v29 = vmul.f32 %v3344_v44, %v3917_v21  ;;  %v3922_v44 = vld [vmem:[#allocation24_spill] sm:$0xff]  ;;  %v3927_v18 = vld [vmem:[#allocation38_spill] sm:$0xff] }
 0x216   : > { %v3398_v26 = vpop.eup %1800  ;;  %1820 = vpow2.f32 %v1428_v46  ;;  %v1335_v14 = vsub.f32 1.0, %v3396_v58  ;;  %v548_v2 = vmul.f32 %v3356_v36, %v3918_v17  ;;  %v611_v10 = vmul.f32 %v1789_v19, %v3919_v25  ;;  %v3924_v46 = vld [vmem:[#allocation49_spill] sm:$0xff] }
 0x217   : > { %v3401_v0 = vpop.eup %1802  ;;  %1822 = vpow2.f32 %v1063_v13  ;;  %v612_v15 = vmul.f32 %v1791_v16, %v3920_v8  ;;  %v625_v59 = vmul.f32 %v1789_v19, %v3921_v41  ;;  %v626_v1 = vmul.f32 %v1791_v16, %v3922_v44  ;;  %v3925_v13 = vld [vmem:[#allocation29_spill] sm:$0xff]  ;;  %v3926_v16 = vld [vmem:[#allocation55_spill] sm:$0xff]  ;;  %v3932_v44 = vld [vmem:[#allocation58_spill] sm:$0xff] }
 0x218   : > { %v3406_v11 = vpop.eup %1804  ;;  %v1268_v32 = vadd.f32 1.0, %v3401_v0  ;;  %1824 = vrcp.f32 %v1267_v20  ;;  %v597_v39 = vcombine.low %v593_v34, %v594_v35  ;;  %v521_v12 = vadd.f32 %v3923_v23, %v519_v30  ;;  %v3928_v30 = vld [vmem:[#allocation56_spill] sm:$0xff] }
 0x219   : > { %v1807_v62 = vpop.eup %1806  ;;  %v795_v33 = vadd.f32 %v3406_v11, %v665_v24  ;;  %v537_v38 = vcombine.low %v533_v7, %v534_v57  ;;  %v797_v63 = vmul.f32 %v3406_v11, %v3924_v46  ;;  %v551_v45 = vcombine.low %v547_v29, %v548_v2  ;;  %v3929_v29 = vld [vmem:[#allocation32_spill] sm:$0xff]  ;;  %v3930_v2 = vld [vmem:[#allocation18_spill] sm:$0xff] }
 0x21a   : > { %v3420_v27 = vpop.eup %1808  ;;  %v796_v61 = vadd.f32 %v1807_v62, %v666_v48  ;;  %v798_v9 = vmul.f32 %v1807_v62, %v3925_v13  ;;  %1826 = vrcp.f32 %v1268_v32  ;;  %v667_v5 = vmul.f32 %v3365_v54, %v3926_v16 }
 0x21b   : > { %v3426_v37 = vpop.eup %1810  ;;  %v1351_v51 = vadd.f32 1.0, %v3420_v27  ;;  %v668_v24 = vmul.f32 %v3368_v4, %v3927_v18  ;;  %v615_v48 = vcombine.low %v611_v10, %v612_v15  ;;  %v629_v35 = vcombine.low %v625_v59, %v626_v1  ;;  %v3931_v15 = vld [vmem:[#allocation19_spill] sm:$0xff] }
 0x21c   : > { %v1813_v36 = vpop.eup %1812  ;;  %v865_v20 = vadd.f32 %v3426_v37, %v795_v33  ;;  %v811_v7 = vmul.f32 %v3406_v11, %v3928_v30  ;;  %v812_v17 = vmul.f32 %v1807_v62, %v3929_v29  ;;  %v539_v32 = vadd.f32 %v3930_v2, %v537_v38 }
 0x21d   : > { %v3432_v3 = vpop.eup %1814  ;;  %v866_v47 = vadd.f32 %v1813_v36, %v796_v61  ;;  %v599_v25 = vadd.f32 %v597_v39, %v521_v12  ;;  %1828 = vrcp.f32 %v1351_v51  ;;  %v801_v10 = vcombine.low %v797_v63, %v798_v9  ;;  %v3933_v61 = vld [vmem:[#allocation40_spill] sm:$0xff]  ;;  %v3934_v39 = vld [vmem:[#allocation54_spill] sm:$0xff] }
 0x21e   : > { %v3438_v19 = vpop.eup %1816  ;;  %v1352_v21 = vadd.f32 1.0, %v3432_v3  ;;  %v553_v41 = vadd.f32 %v3931_v15, %v551_v45  ;;  %v671_v59 = vcombine.low %v667_v5, %v668_v24  ;;  %v681_v1 = vmul.f32 %v3365_v54, %v3932_v44  ;;  %v3935_v51 = vld [vmem:[#allocation30_spill] sm:$0xff]  ;;  %v3936_v5 = vld [vmem:[#allocation60_spill] sm:$0xff] }
 0x21f   : > { %v3445_v34 = vpop.eup %1818  ;;  %v1430_v33 = vadd.f32 1.0, %v3438_v19  ;;  %v682_v46 = vmul.f32 %v3368_v4, %v3933_v61  ;;  %v995_v13 = vadd.f32 %v3373_v28, %v865_v20  ;;  %v867_v12 = vmul.f32 %v3426_v37, %v3934_v39  ;;  %v3937_v24 = vld [vmem:[#allocation42_spill] sm:$0xff]  ;;  %v3938_v20 = vld [vmem:[#allocation61_spill] sm:$0xff]  ;;  %v3939_v61 = vld [vmem:[#allocation35_spill] sm:$0xff] }
 0x220   : > { %v3449_v57 = vpop.eup %1820  ;;  %v868_v16 = vmul.f32 %v1813_v36, %v3935_v51  ;;  %v996_v63 = vadd.f32 %v3378_v6, %v866_v47  ;;  %v617_v9 = vadd.f32 %v615_v48, %v539_v32  ;;  %v673_v45 = vadd.f32 %v671_v59, %v599_v25  ;;  %v3940_v32 = vld [vmem:[#allocation59_spill] sm:$0xff]  ;;  %v3941_v25 = vld [vmem:[#allocation33_spill] sm:$0xff] }
 0x221   : > { %v3454_v8 = vpop.eup %1822  ;;  %v1431_v38 = vadd.f32 1.0, %v3449_v57  ;;  %v695_v18 = vmul.f32 %v3365_v54, %v3936_v5  ;;  %v696_v30 = vmul.f32 %v3368_v4, %v3937_v24  ;;  %1830 = vrcp.f32 %v1352_v21  ;;  %v3942_v5 = vld [vmem:[#allocation63_spill] sm:$0xff] }
 0x222   : > { %v815_v29 = vcombine.low %v811_v7, %v812_v17  ;;  %v825_v44 = vmul.f32 %v3406_v11, %v3938_v20  ;;  %v826_v40 = vmul.f32 %v1807_v62, %v3939_v61  ;;  %v3475_v39 = vpop.eup %1824  ;;  %1832 = vrcp.f32 %v1430_v33  ;;  %v3943_v33 = vld [vmem:[#allocation36_spill] sm:$0xff]  ;;  %v3946_v20 = vld [vmem:[#allocation62_spill] sm:$0xff]  ;;  %v3947_v61 = vld [vmem:[#allocation45_spill] sm:$0xff] }
 0x223   : > { %v631_v51 = vadd.f32 %v629_v35, %v553_v41  ;;  %v685_v47 = vcombine.low %v681_v1, %v682_v46  ;;  %v1065_v48 = vadd.f32 %v3445_v34, %v995_v13  ;;  %1834 = vrcp.f32 %v1431_v38  ;;  %v3944_v1 = vld [vmem:[#allocation27_spill] sm:$0xff]  ;;  %v3945_v13 = vld [vmem:[#allocation20_spill] sm:$0xff] }
 0x224   : > { %v881_v54 = vmul.f32 %v3426_v37, %v3940_v32  ;;  %v882_v4 = vmul.f32 %v1813_v36, %v3941_v25  ;;  %v1066_v7 = vadd.f32 %v3454_v8, %v996_v63  ;;  %v3482_v21 = vpop.eup %1826  ;;  %v871_v11 = vcombine.low %v867_v12, %v868_v16 }
 0x225   : > { %v687_v17 = vadd.f32 %v685_v47, %v617_v9  ;;  %v699_v62 = vcombine.low %v695_v18, %v696_v30  ;;  %v803_v59 = vadd.f32 %v801_v10, %v673_v45  ;;  %v895_v35 = vmul.f32 %v3426_v37, %v3942_v5  ;;  %v3949_v45 = vld [vmem:[#allocation22_spill] sm:$0xff] }
 0x226   : > { %v896_v41 = vmul.f32 %v1813_v36, %v3943_v33  ;;  %v1067_v46 = vmul.f32 %v3445_v34, %v3944_v1  ;;  %v1068_v38 = vmul.f32 %v3454_v8, %v3945_v13  ;;  %v997_v63 = vmul.f32 %v3373_v28, %v3946_v20  ;;  %v3948_v36 = vld [vmem:[#allocation28_spill] sm:$0xff] }
 0x227   : > { %v701_v24 = vadd.f32 %v699_v62, %v631_v51  ;;  %v998_v12 = vmul.f32 %v3378_v6, %v3947_v61  ;;  %v1135_v10 = vadd.f32 %v3380_v50, %v1065_v48  ;;  %v3496_v16 = vpop.eup %1828  ;;  %v3501_v37 = vmul.f32 %v1335_v14, %v1335_v14  ;;  %v3951_v33 = vld [vmem:[#allocation64_spill] sm:$0xff] }
 0x228   : > { %v3505_v9 = vmul.f32 %v3445_v34, %v3948_v36  ;;  %v3509_v18 = vmul.f32 %v3454_v8, %v3949_v45  ;;  %v1136_v30 = vadd.f32 %v3388_v60, %v1066_v7  ;;  %v3950_v51 = vsub.f32 1.0, %v3398_v26  ;;  %v3952_v20 = vld [vmem:[#allocation52_spill] sm:$0xff]  ;;  %v3958_v36 = vld [vmem:[#allocation47_spill] sm:$0xff] }
 0x229   : > { %vm1273_vm15 = vcmp.ge.f32.partialorder %v3324_v22, 0.0  ;;  %v829_v14 = vcombine.low %v825_v44, %v826_v40  ;;  %v817_v48 = vadd.f32 %v815_v29, %v687_v17  ;;  %v873_v32 = vadd.f32 %v871_v11, %v803_v59  ;;  %v3954_v11 = vld [vmem:[#allocation25_spill] sm:$0xff] }
 0x22a   : > { %v3515_v47 = vmul.f32 %v3950_v51, %v3950_v51  ;;  %v885_v25 = vcombine.low %v881_v54, %v882_v4  ;;  %v899_v62 = vcombine.low %v895_v35, %v896_v41  ;;  %v1071_v5 = vcombine.low %v1067_v46, %v1068_v38  ;;  %v3953_v54 = vld [vmem:[#allocation31_spill] sm:$0xff]  ;;  %v3955_v46 = vld [vmem:[#allocation65_spill] sm:$0xff] }
 0x22b   : > { %v1011_v1 = vmul.f32 %v3373_v28, %v3951_v33  ;;  %vm1274_vm0 = vcmp.ge.f32.partialorder %v3333_v52, 0.0  ;;  %vm1357_vm1 = vcmp.ge.f32.partialorder %v3339_v42, 0.0  ;;  %vm1358_vm2 = vcmp.ge.f32.partialorder %v3347_v53, 0.0  ;;  %v1831_v29 = vpop.eup %1830 }
 0x22c   : > { %v831_v7 = vadd.f32 %v829_v14, %v701_v24  ;;  %v1001_v13 = vcombine.low %v997_v63, %v998_v12  ;;  %v1012_v40 = vmul.f32 %v3378_v6, %v3952_v20  ;;  %1836 = vrcp.f32 %v1135_v10  ;;  %v1833_v59 = vpop.eup %1832  ;;  %v3956_v24 = vld [vmem:[#allocation57_spill] sm:$0xff]  ;;  %v3957_v10 = vld [vmem:[#allocation48_spill] sm:$0xff]  ;;  %v3960_v14 = vld [vmem:[#allocation66_spill] sm:$0xff] }
 0x22d   : > { %vm1436_vm3 = vcmp.ge.f32.partialorder %v3351_v31, 0.0  ;;  %vm1437_vm4 = vcmp.ge.f32.partialorder %v3360_v43, 0.0  ;;  %v1085_v44 = vcombine.low %v3505_v9, %v3509_v18  ;;  %v1095_v4 = vmul.f32 %v3445_v34, %v3953_v54  ;;  %v1835_v61 = vpop.eup %1834  ;;  %v3959_v9 = vld [vmem:[#allocation34_spill] sm:$0xff] }
 0x22e   : > { %v1096_v17 = vmul.f32 %v3454_v8, %v3954_v11  ;;  %1838 = vrcp.f32 %v1136_v30  ;;  %v887_v35 = vadd.f32 %v885_v25, %v817_v48  ;;  %v1003_v41 = vadd.f32 %v1001_v13, %v873_v32  ;;  %v3961_v48 = vld [vmem:[#allocation46_spill] sm:$0xff]  ;;  %v3962_v11 = vld [vmem:[#allocation13_spill] sm:$0xff] }
 0x22f   : > { %v1025_v38 = vmul.f32 %v3373_v28, %v3955_v46  ;;  %v1026_v63 = vmul.f32 %v3378_v6, %v3956_v24  ;;  %v1275_v12 = vmul.f32 %v3475_v39, %v3390_v49  ;;  %v1303_v34 = vcombine.high %v3957_v10, %v3957_v10  ;;  %v3963_v46 = vld [vmem:[#allocation53_spill] sm:$0xff] }
 0x230   : > { %v1382_v8 = vcombine.high %v3958_v36, %v3958_v36  ;;  %v1461_v45 = vcombine.high %v3959_v9, %v3959_v9  ;;  %v901_v51 = vadd.f32 %v899_v62, %v831_v7  ;;  %v1015_v28 = vcombine.low %v1011_v1, %v1012_v40 }
 0x231   : > { %v1137_v6 = vmul.f32 %v3380_v50, %v3960_v14  ;;  %v1138_v32 = vmul.f32 %v3388_v60, %v3961_v48  ;;  %v1276_v49 = vmul.f32 %v3482_v21, %v3401_v0  ;;  %v1359_v25 = vmul.f32 %v3496_v16, %v3420_v27 }
 0x232   : > { %v1360_v33 = vmul.f32 %v1831_v29, %v3432_v3  ;;  %v1438_v13 = vmul.f32 %v1833_v59, %v3438_v19  ;;  %v1439_v20 = vmul.f32 %v1835_v61, %v3449_v57  ;;  %v1017_v62 = vadd.f32 %v1015_v28, %v887_v35  ;;  %v3964_v19 = vld [vmem:[#allocation43_spill] sm:$0xff] }
 0x233   : > { %v1029_v1 = vcombine.low %v1025_v38, %v1026_v63  ;;  %v1073_v7 = vadd.f32 %v1071_v5, %v1003_v41  ;;  %v1099_v40 = vcombine.low %v1095_v4, %v1096_v17  ;;  %v1277_v54 = vsel %vm1273_vm15, %v3475_v39, %v1275_v12 }
 0x234   : > { %v1151_v0 = vmul.f32 %v3380_v50, %v3962_v11  ;;  %v1152_v27 = vmul.f32 %v3388_v60, %v3963_v46  ;;  %v1141_v14 = vcombine.low %v1137_v6, %v1138_v32  ;;  %v1165_v57 = vmul.f32 %v3380_v50, %v3964_v19 }
 0x235   : > { %v1031_v3 = vadd.f32 %v1029_v1, %v901_v51  ;;  %v1166_v5 = vmul.f32 %v3388_v60, %v2949_v56  ;;  %v1278_v22 = vsel %vm1274_vm0, %v3482_v21, %v1276_v49  ;;  %v1361_v39 = vsel %vm1357_vm1, %v3496_v16, %v1359_v25 }
 0x236   : > { %v1362_v17 = vsel %vm1358_vm2, %v1831_v29, %v1360_v33  ;;  %v1837_v35 = vpop.eup %1836  ;;  %v1440_v50 = vsel %vm1436_vm3, %v1833_v59, %v1438_v13  ;;  %v1441_v56 = vsel %vm1437_vm4, %v1835_v61, %v1439_v20  ;;  %v1087_v60 = vadd.f32 %v1085_v44, %v1017_v62 }
 0x237   : > { %v1155_v63 = vcombine.low %v1151_v0, %v1152_v27  ;;  %v1308_v42 = vcombine.high %v3413_v55, %v3413_v55  ;;  %v1101_v16 = vadd.f32 %v1099_v40, %v1031_v3  ;;  %v1169_v29 = vcombine.low %v1165_v57, %v1166_v5  ;;  %v3967_v5 = vld [vmem:[#allocation14_spill] sm:$0xff] }
 0x238   : > { %v1839_v38 = vpop.eup %1838  ;;  %v1387_v31 = vcombine.high %v3501_v37, %v3501_v37  ;;  %v1466_v43 = vcombine.high %v3515_v47, %v3515_v47 }
 0x239   : > { %v1185_v12 = vcombine.low %v1837_v35, %v1839_v38  ;;  %v1157_v49 = vadd.f32 %v1155_v63, %v1087_v60  ;;  %v1171_v62 = vadd.f32 %v1169_v29, %v1101_v16  ;;  %v3968_v35 = vld [vmem:[#allocation15_spill] sm:$0xff] }
 0x23b   : > { %v1398_v11 = vmul.f32 %v1185_v12, %v1171_v62 }
 0x246   : > { %v3518_v58 = vpop.xlane.xlu0 %1295 }
 0x24b   : > { %v1379_v18 = vpop.xlane.xlu0 %1378 }
 0x24c   : > { %v1380_v52 = vadd.f32 %v1379_v18, %v3518_v58 }
 0x24f   : > { %v1458_v41 = vpop.xlane.xlu0 %1457 }
 0x250   : > { %v1459_v59 = vadd.f32 %v1458_v41, %v1380_v52  ;;  %v3969_v41 = vld [vmem:[#allocation16_spill] sm:$0xff] }
 0x251   : > { %v1287_v26 = vpop.xlane.xlu1 %1286 }
 0x255   : > { %v1370_v30 = vpop.xlane.xlu1 %1369 }
 0x256   : > { %v1371_v4 = vadd.f32 %v1370_v30, %v1287_v26  ;;  %v1143_v26 = vadd.f32 %v1141_v14, %v1073_v7 }
 0x259   : > { %v1449_v24 = vpop.xlane.xlu1 %1448 }
 0x25a   : > { %v1450_v21 = vadd.f32 %v1449_v24, %v1371_v4 }
 0x25c   : > { %v1477_v28 = vmul.f32 0.0013020834, %v1450_v21 }
 0x25d   : > { %v1300_v53 = vpop.permute.xlu1 %1299 }
 0x25e   : > { %v1305_v44 = vmul.f32 %v1300_v53, %v3957_v10  ;;  %v1306_v61 = vmul.f32 %v1303_v34, %v1300_v53  ;;  %v1384_v58 = vmul.f32 %v3958_v36, %v1300_v53  ;;  %v1385_v18 = vmul.f32 %v1382_v8, %v1300_v53 }
 0x25f   : > { %v1463_v30 = vmul.f32 %v3959_v9, %v1300_v53  ;;  %v1464_v51 = vmul.f32 %v1461_v45, %v1300_v53  ;;  %v1479_v10 = vmul.f32 0.0013020834, %v1459_v59  ;;  %vm1478_vm5 = vcmp.lt.f32.partialorder %v1477_v28, 0.0001 }
 0x260   : > { %v1310_v6 = vmul.f32 %v1305_v44, %v3413_v55  ;;  %v1311_v48 = vmul.f32 %v1308_v42, %v1306_v61  ;;  %v1389_v32 = vmul.f32 %v1384_v58, %v3501_v37  ;;  %v1390_v25 = vmul.f32 %v1387_v31, %v1385_v18 }
 0x261   : > { %v1468_v33 = vmul.f32 %v1463_v30, %v3515_v47  ;;  %v1469_v13 = vmul.f32 %v1466_v43, %v1464_v51  ;;  %v1187_v45 = vmul.f32 %v1185_v12, %v1143_v26  ;;  %v1319_v55 = vmul.f32 %v1185_v12, %v1157_v49 }
 0x262   : > { %v1312_v34 = vmul.f32 %v1310_v6, %v1277_v54  ;;  %v1313_v20 = vmul.f32 %v1311_v48, %v1278_v22  ;;  %v1391_v36 = vmul.f32 %v1389_v32, %v1361_v39  ;;  %v1392_v8 = vmul.f32 %v1390_v25, %v1362_v17 }
 0x263   : > { %v1470_v1 = vmul.f32 %v1468_v33, %v1440_v50  ;;  %v1471_v9 = vmul.f32 %v1469_v13, %v1441_v56  ;;  %vm1480_vm6 = vcmp.lt.f32.partialorder %v1479_v10, 0.0001 }
 0x264   : > { %v1316_v7 = vcombine.low %v1312_v34, %v1313_v20  ;;  %v1395_v40 = vcombine.low %v1391_v36, %v1392_v8  ;;  %vm3594_vm7 = vmor %vm1478_vm5, %vm1480_vm6 }
 0x265   : > { %v1474_v37 = vcombine.low %v1470_v1, %v1471_v9 }
 0x266   : > { %v1318_v0 = vadd.f32 %v1316_v7, %v1187_v45  ;;  %v1397_v54 = vadd.f32 %v1395_v40, %v1319_v55 }
 0x267   : > { %v1476_v46 = vadd.f32 %v1474_v37, %v1398_v11 }
 0x268   : > { %v1483_v27 = vcombine.high %v1318_v0, %v1318_v0  ;;  %v1485_v24 = vsel %vm3594_vm7, %v3923_v23, %v1318_v0  ;;  %v1497_v14 = vcombine.high %v1397_v54, %v1397_v54  ;;  %v1499_v19 = vsel %vm3594_vm7, %v3930_v2, %v1397_v54 }
 0x269   : > { %v1487_v3 = vmax.f32 %v1485_v24, 1e-05  ;;  %v1512_v57 = vcombine.high %v1476_v46, %v1476_v46  ;;  %v1501_v22 = vmax.f32 %v1499_v19, 1e-05  ;;  %v1514_v39 = vsel %vm3594_vm7, %v3931_v15, %v1476_v46 }
 0x26a   : > { %v1486_v4 = vsel %vm3594_vm7, %v3967_v5, %v1483_v27  ;;  %v1500_v23 = vsel %vm3594_vm7, %v3968_v35, %v1497_v14  ;;  %v1516_v56 = vmax.f32 %v1514_v39, 1e-05 }
 0x26b   : > { %v1488_v17 = vmax.f32 %v1486_v4, 1e-05  ;;  %v1515_v50 = vsel %vm3594_vm7, %v3969_v41, %v1512_v57  ;;  %v1502_v2 = vmax.f32 %v1500_v23, 1e-05  ;;  %v1489_v60 = vmin.f32 %v1487_v3, 1.0 }
 0x26c   : > { %v1517_v38 = vmax.f32 %v1515_v50, 1e-05  ;;  %v1503_v15 = vmin.f32 %v1501_v22, 1.0  ;;  %v1518_v63 = vmin.f32 %v1516_v56, 1.0 }
 0x26d   : > { %v1490_v26 = vmin.f32 %v1488_v17, 1.0  ;;  %v1504_v52 = vmin.f32 %v1502_v2, 1.0 }
 0x26e   : > { %v1519_v42 = vmin.f32 %v1517_v38, 1.0 }
 0x26f   : > { %v1493_v21 = vcombine.low %v1489_v60, %v1490_v26  ;;  %v1507_v53 = vcombine.low %v1503_v15, %v1504_v52 }
 0x270   : > { %v1522_v16 = vcombine.low %v1518_v63, %v1519_v42 }
 0x271   : > { %1495 = vst [vmem:[%s235_s7] sm:$0xff] %v1493_v21  ;;  %1659 = vst [vmem:[%s235_s7 + $0x8] sm:$0xff] %v1507_v53 }
 0x272   : > { %1660 = vst [vmem:[%s235_s7 + $0x10] sm:$0xff] %v1522_v16 }
 0x273   : > { %1944 = shalt.err (!%p1941_p5)
}
 0x274   : > { %s1945_s20 = scalar_lea.hbm %s3622_s4, 384  ;;  %s1949_s10 = scalar_lea.hbm %s3671_s3, 768 }
 0x275   : > { %p1946_p11 = scmp.ne.s32.totalorder %s3622_s4, %s1945_s20  ;;  %p1950_p10 = scmp.lt.u32.totalorder %s3622_s4, %s3671_s3 }
 0x276   : > { %p1951_p13 = scmp.lt.u32.totalorder %s1949_s10, %s1945_s20  ;;  %p1953_p7 = scmp.lt.u32.totalorder %s1945_s20, %s3622_s4 }
 0x277   : > { %p1947_p9 = pnand %p1946_p11, %p3970_p12 }
 0x278   : > { %p1952_p4 = por %p1951_p13, %p1950_p10 }
 0x279   : > { %p1948_p8 = pneg %p1947_p9 }
 0x27a   : > { %p1954_p2 = por %p1953_p7, %p1952_p4 }
 0x27c   : > { %p1955_p6 = pnand %p1954_p2, %p1948_p8 }
 0x27e   : > { %1958 = shalt.err (!%p1955_p6)
}
 0x27f   : > { %s2030_s24 = smov 128   ;;  %s2031_s5 = smov 256  }
 0x280   : > { %s2032_s7 = smov 8  }
 0x281   : > { %1677 = dma.vmem_to_hbm [thread:$0]  (%p3970_p12), %s3624_s28, 384, %s3622_s4, %s1527_s21, %s2030_s24, %s2031_s5, %s2032_s7  }
 0x282 PF: > { %s1555_s8 = sand.u32 1, %s1993_s12   ;;  %p3971_p0 = scmp.ne.s32.totalorder %s3784_s27, 0 }
 0x283   : > { %p3972_p3 = scmp.ge.s32.totalorder %s2005_s15, 2  ;;  %s1556_s29 = scalar_lea.sflag [#allocation4], %s1555_s8 }
 0x285   : > { %p1691_p1 = pnand %p3972_p3, %p3971_p0 }
 0x287   : > { %1988 = dma.done.wait (!%p1691_p1), %s1556_s29, 384  }
 0x288   : > { %1990 = vsyncadd (!%p1691_p1), %s1556_s29, 4294966912  ;;  %p17_p5 = scmp.ge.s32.totalorder %s2074_s16, 4   ;;  %s3973_s12 = smov %s1997_s13 }
 0x289   : > { %s3974_s13 = smov %s2001_s14  ;;  %s3975_s14 = smov %s2085_s19 }
 0x28a   : > { %s3976_s15 = smov %s2074_s16  ;;  %19 = sbr.rel (!%p17_p5) target bundleno = 6 (0x6), region = 101 }
 0x291   :  { %1561 = vsyncpa [#allocation3], 1 }
 0x292   :  { %1563 = vsyncpa [#allocation3 + $0x1], 1 }
 0x293   :  { %1564 = vsyncpa [#allocation6], 1 }
 0x294   :  { %1565 = vsyncpa [#allocation4], 1 }
 0x295   :  { %1567 = vsyncpa [#allocation4 + $0x1], 1 }

</bundles_post_ra>
